<compile_context>
chip_gen: v7x
topology: tpu7x:2x2x1
jax: 0.10.0
libtpu: 0.0.40
codegen_flags: <defaults>
</compile_context>

<pallas_src>
import functools
import math

import jax
import jax.numpy as jnp
import numpy as np
from jax.experimental import pallas as pl
from jax.experimental.pallas import tpu as pltpu

_LN_EPS = 1e-5              # PyTorch LayerNorm default
_NEG_INF = -1e9             # additive mask value
_MXU_DTYPE = jnp.bfloat16   # matmul operand dtype (f32 accumulation)
_ACT_DTYPE = jnp.bfloat16   # inter-kernel activation dtype (HBM traffic)


# ----------------------------------------------------------------------------
# In-kernel helpers
# ----------------------------------------------------------------------------
def _xw_t(x, w):
    # x: (M, K)   w: (OUT, K)  (PyTorch Linear layout) -> (M, OUT), f32 accum.
    # Contract dim 1 of both operands: no weight transpose / XLU copy.
    return jax.lax.dot_general(x, w, (((1,), (1,)), ((), ())),
                               preferred_element_type=jnp.float32)


def _layer_norm(x, g, b):
    mu = jnp.mean(x, axis=-1, keepdims=True)
    var = jnp.mean(jnp.square(x - mu), axis=-1, keepdims=True)
    return (x - mu) * jax.lax.rsqrt(var + _LN_EPS) * g + b


def _mha(x_q, x_kv, wqkv_ref, bqkv_ref, wout_ref, *, nhead, scale, am, kp):
    """Multi-head attention core for one batch element, fully in VMEM.

    x_q: (Tq, d) bf16, x_kv: (Tk, d) bf16 (already-loaded values).
    wqkv_ref: (3H, dh, d) bf16 ref   -- q heads, then k heads, then v heads
    bqkv_ref: (3H, 1, dh) f32 ref
    wout_ref: (H, d, dh) bf16 ref    -- out_proj columns belonging to each head
    am: (Tq, Tk) f32 additive mask or None; kp: (1, Tk) additive f32 or None.
    Returns (Tq, d) f32 (out_proj bias NOT added).
    Heads use static leading-dim ref loads -> no sub-lane slicing, no concat;
    the out-projection is accumulated per head so the merged layout is free.
    """
    y = None
    for h in range(nhead):
        qh = _xw_t(x_q, wqkv_ref[h]) + bqkv_ref[h]                    # (Tq, dh)
        kh = _xw_t(x_kv, wqkv_ref[nhead + h]) + bqkv_ref[nhead + h]   # (Tk, dh)
        vh = _xw_t(x_kv, wqkv_ref[2 * nhead + h]) + bqkv_ref[2 * nhead + h]
        s = jax.lax.dot_general(qh.astype(_MXU_DTYPE), kh.astype(_MXU_DTYPE),
                                (((1,), (1,)), ((), ())),
                                preferred_element_type=jnp.float32) * scale
        if am is not None:
            s = s + am
        if kp is not None:
            s = s + kp
        mx = jnp.max(s, axis=-1, keepdims=True)
        p = jnp.exp(s - mx)
        denom = jnp.sum(p, axis=-1, keepdims=True)                    # (Tq, 1)
        o = jnp.dot(p.astype(_MXU_DTYPE), vh.astype(_MXU_DTYPE),
                    preferred_element_type=jnp.float32)               # (Tq, dh)
        o = o * pl.reciprocal(denom, approx=True)                     # EUP slot
        yh = jax.lax.dot_general(o.astype(_MXU_DTYPE), wout_ref[h],
                                 (((1,), (1,)), ((), ())),
                                 preferred_element_type=jnp.float32)  # (Tq, d)
        y = yh if y is None else y + yh
    return y


# ----------------------------------------------------------------------------
# Fused per-layer kernels (grid over batch; one batch element per step)
# ----------------------------------------------------------------------------
def _encoder_layer_kernel(*refs, nhead, scale, use_kp):
    it = iter(refs)
    x_ref = next(it)
    kp_ref = next(it) if use_kp else None
    wqkv, bqkv, wout, bout = next(it), next(it), next(it), next(it)
    g1, b1 = next(it), next(it)
    w1, bf1, w2, bf2 = next(it), next(it), next(it), next(it)
    g2, b2 = next(it), next(it)
    o_ref = next(it)

    x = x_ref[...]                                            # (S, d) bf16
    kp = kp_ref[...] if use_kp else None                      # (1, S) f32
    attn = _mha(x, x, wqkv, bqkv, wout, nhead=nhead, scale=scale, am=None, kp=kp)
    h = _layer_norm(x.astype(jnp.float32) + attn + bout[...], g1[...], b1[...])
    hh = jnp.maximum(_xw_t(h.astype(_MXU_DTYPE), w1[...]) + bf1[...], 0.0)
    y2 = _xw_t(hh.astype(_MXU_DTYPE), w2[...]) + bf2[...]
    o = _layer_norm(h + y2, g2[...], b2[...])
    o_ref[...] = o.astype(o_ref.dtype)


def _decoder_layer_kernel(*refs, nhead, scale, use_am, use_tkp, use_mkp):
    it = iter(refs)
    y_ref, mem_ref = next(it), next(it)
    am_ref = next(it) if use_am else None
    tkp_ref = next(it) if use_tkp else None
    mkp_ref = next(it) if use_mkp else None
    wqkv_s, bqkv_s, wout_s, bout_s = next(it), next(it), next(it), next(it)
    g1, b1 = next(it), next(it)
    wqkv_c, bqkv_c, wout_c, bout_c = next(it), next(it), next(it), next(it)
    g2, b2 = next(it), next(it)
    w1, bf1, w2, bf2 = next(it), next(it), next(it), next(it)
    g3, b3 = next(it), next(it)
    o_ref = next(it)

    y = y_ref[...]                                            # (T, d) bf16
    mem = mem_ref[...]                                        # (S, d) bf16
    am = am_ref[...] if use_am else None
    tkp = tkp_ref[...] if use_tkp else None
    mkp = mkp_ref[...] if use_mkp else None

    # self-attention + residual + LN
    attn = _mha(y, y, wqkv_s, bqkv_s, wout_s,
                nhead=nhead, scale=scale, am=am, kp=tkp)
    h = _layer_norm(y.astype(jnp.float32) + attn + bout_s[...], g1[...], b1[...])

    # cross-attention (q from decoder state, k/v from memory) + residual + LN
    attn2 = _mha(h.astype(_MXU_DTYPE), mem, wqkv_c, bqkv_c, wout_c,
                 nhead=nhead, scale=scale, am=None, kp=mkp)
    h2 = _layer_norm(h + attn2 + bout_c[...], g2[...], b2[...])

    # FFN + residual + LN  (hidden never leaves VMEM)
    hh = jnp.maximum(_xw_t(h2.astype(_MXU_DTYPE), w1[...]) + bf1[...], 0.0)
    y2 = _xw_t(hh.astype(_MXU_DTYPE), w2[...]) + bf2[...]
    o = _layer_norm(h2 + y2, g3[...], b3[...])
    o_ref[...] = o.astype(o_ref.dtype)


def _ln_kernel(x_ref, g_ref, b_ref, o_ref):
    o_ref[...] = _layer_norm(x_ref[...].astype(jnp.float32),
                             g_ref[...], b_ref[...]).astype(o_ref.dtype)


def _linear_kernel(x_ref, w_ref, b_ref, o_ref):
    y = _xw_t(x_ref[...].astype(_MXU_DTYPE), w_ref[...]) + b_ref[...]
    o_ref[...] = y.astype(o_ref.dtype)


# ----------------------------------------------------------------------------
# Spec helpers
# ----------------------------------------------------------------------------
_SINGLE_BUFFER_CONSTS = None


def _probe_single_buffering():
    """Check once whether BlockSpec(pipeline_mode=pl.Buffered(1)) is supported."""
    def k(x_ref, o_ref):
        o_ref[...] = x_ref[...] + 1.0
    try:
        spec = pl.BlockSpec((8, 128), lambda i: (0, 0), pipeline_mode=pl.Buffered(1))
        pl.pallas_call(
            k, grid=(1,), in_specs=[spec],
            out_specs=pl.BlockSpec((8, 128), lambda i: (0, 0)),
            out_shape=jax.ShapeDtypeStruct((8, 128), jnp.float32),
        )(jnp.zeros((8, 128), jnp.float32))
        return True
    except Exception:
        return False


def _const_spec(shape):
    """Spec for a block whose index_map is constant: single-buffer it."""
    global _SINGLE_BUFFER_CONSTS
    if _SINGLE_BUFFER_CONSTS is None:
        _SINGLE_BUFFER_CONSTS = _probe_single_buffering()
    nd = len(shape)
    index_map = lambda *_: (0,) * nd
    if _SINGLE_BUFFER_CONSTS:
        return pl.BlockSpec(shape, index_map, pipeline_mode=pl.Buffered(1))
    return pl.BlockSpec(shape, index_map)


def _row_tile(m):
    # Largest multiple-of-8 divisor of m that still leaves >=2 grid steps
    # (capped at the measured ~512-row sweet spot); falls back to the full dim.
    for t in (512, 256, 128, 64, 32, 16, 8):
        if t < m and m % t == 0:
            return t
    return m


def _col_tile(n):
    for t in (512, 256, 128):
        if n % t == 0:
            return t
    return n


# ----------------------------------------------------------------------------
# pallas_call wrappers
# ----------------------------------------------------------------------------
def pallas_encoder_layer(x, kpm_add, p, nhead):
    # x: (N, S, d) bf16; kpm_add: (N, 1, S) additive f32 or None
    n, s, d = x.shape
    use_kp = kpm_add is not None
    kern = functools.partial(_encoder_layer_kernel, nhead=nhead,
                             scale=1.0 / math.sqrt(d // nhead), use_kp=use_kp)
    a = p["self_attn"]
    consts = [a["wqkv"], a["bqkv"], a["wout_h"], a["bout"],
              p["norm1_g"], p["norm1_b"],
              p["lin1_w"], p["lin1_b"], p["lin2_w"], p["lin2_b"],
              p["norm2_g"], p["norm2_b"]]
    args = [x]
    specs = [pl.BlockSpec((None, s, d), lambda i: (i, 0, 0))]
    if use_kp:
        args.append(kpm_add)
        specs.append(pl.BlockSpec((None, 1, s), lambda i: (i, 0, 0)))
    args += consts
    specs += [_const_spec(c.shape) for c in consts]
    return pl.pallas_call(
        kern,
        grid=(n,),
        in_specs=specs,
        out_specs=pl.BlockSpec((None, s, d), lambda i: (i, 0, 0)),
        out_shape=jax.ShapeDtypeStruct((n, s, d), _ACT_DTYPE),
        compiler_params=pltpu.CompilerParams(dimension_semantics=("parallel",)),
    )(*args)


def pallas_decoder_layer(y, mem, tgt_mask, tkp_add, mkp_add, p, nhead):
    # y: (N, T, d) bf16; mem: (N, S, d) bf16; tgt_mask: (T, T) f32 or None
    n, t, d = y.shape
    s = mem.shape[1]
    use_am = tgt_mask is not None
    use_tkp = tkp_add is not None
    use_mkp = mkp_add is not None
    kern = functools.partial(_decoder_layer_kernel, nhead=nhead,
                             scale=1.0 / math.sqrt(d // nhead),
                             use_am=use_am, use_tkp=use_tkp, use_mkp=use_mkp)
    sa, ca = p["self_attn"], p["cross_attn"]
    consts = [sa["wqkv"], sa["bqkv"], sa["wout_h"], sa["bout"],
              p["norm1_g"], p["norm1_b"],
              ca["wqkv"], ca["bqkv"], ca["wout_h"], ca["bout"],
              p["norm2_g"], p["norm2_b"],
              p["lin1_w"], p["lin1_b"], p["lin2_w"], p["lin2_b"],
              p["norm3_g"], p["norm3_b"]]
    args = [y, mem]
    specs = [pl.BlockSpec((None, t, d), lambda i: (i, 0, 0)),
             pl.BlockSpec((None, s, d), lambda i: (i, 0, 0))]
    if use_am:
        args.append(tgt_mask)
        specs.append(_const_spec((t, t)))
    if use_tkp:
        args.append(tkp_add)
        specs.append(pl.BlockSpec((None, 1, t), lambda i: (i, 0, 0)))
    if use_mkp:
        args.append(mkp_add)
        specs.append(pl.BlockSpec((None, 1, s), lambda i: (i, 0, 0)))
    args += consts
    specs += [_const_spec(c.shape) for c in consts]
    return pl.pallas_call(
        kern,
        grid=(n,),
        in_specs=specs,
        out_specs=pl.BlockSpec((None, t, d), lambda i: (i, 0, 0)),
        out_shape=jax.ShapeDtypeStruct((n, t, d), _ACT_DTYPE),
        compiler_params=pltpu.CompilerParams(dimension_semantics=("parallel",)),
    )(*args)


def pallas_layer_norm(x2, g, b, out_dtype=_ACT_DTYPE):
    m, d = x2.shape
    tm = _row_tile(m)
    return pl.pallas_call(
        _ln_kernel,
        grid=(m // tm,),
        in_specs=[pl.BlockSpec((tm, d), lambda i: (i, 0)),
                  _const_spec(g.shape), _const_spec(b.shape)],
        out_specs=pl.BlockSpec((tm, d), lambda i: (i, 0)),
        out_shape=jax.ShapeDtypeStruct((m, d), out_dtype),
        compiler_params=pltpu.CompilerParams(dimension_semantics=("parallel",)),
    )(x2, g, b)


def pallas_vocab_proj(x2, w, b, out_dtype=jnp.float32):
    # Row- AND vocab-tiled projection; weight/bias blocks follow the vocab axis
    # so large vocabularies never need to be fully VMEM-resident.
    m, d = x2.shape
    v = w.shape[0]
    tm = _row_tile(m)
    tn = _col_tile(v)
    return pl.pallas_call(
        _linear_kernel,
        grid=(m // tm, v // tn),
        in_specs=[pl.BlockSpec((tm, d), lambda i, j: (i, 0)),
                  pl.BlockSpec((tn, d), lambda i, j: (j, 0)),
                  pl.BlockSpec((1, tn), lambda i, j: (0, j))],
        out_specs=pl.BlockSpec((tm, tn), lambda i, j: (i, j)),
        out_shape=jax.ShapeDtypeStruct((m, v), out_dtype),
        compiler_params=pltpu.CompilerParams(
            dimension_semantics=("parallel", "parallel")),
    )(x2, w, b)


# ----------------------------------------------------------------------------
# Full TransformerModel.forward (post-norm, relu, eval-mode dropout)
# ----------------------------------------------------------------------------
def transformer_forward(params, src, tgt, src_key_padding_mask=None,
                        tgt_mask=None, tgt_key_padding_mask=None,
                        memory_key_padding_mask=None, memory=None,
                        only_return_last_col=False):
    d = params["d_model"]
    h = params["nhead"]
    pe = params["pe"]

    def additive_kpm(mask):            # (N, Tk) bool -> (N, 1, Tk) additive f32
        if mask is None:
            return None
        return jnp.where(mask, _NEG_INF, 0.0).astype(jnp.float32)[:, None, :]

    src_kpm = additive_kpm(src_key_padding_mask)
    tgt_kpm = additive_kpm(tgt_key_padding_mask)
    mem_kpm = additive_kpm(memory_key_padding_mask)

    if tgt_mask is None:
        am = None
    elif tgt_mask.dtype == jnp.bool_:
        am = jnp.where(tgt_mask, _NEG_INF, 0.0).astype(jnp.float32)
    else:
        am = tgt_mask.astype(jnp.float32)

    if memory is None:
        # embedding gather + positional encoding done in XLA (not a kernel)
        x = jnp.take(params["enc_emb"], src.T, axis=0) * math.sqrt(d)  # (N,S,d)
        x = (x + pe[: src.shape[0]][None, :, :]).astype(_ACT_DTYPE)
        for lp in params["enc_layers"]:
            x = pallas_encoder_layer(x, src_kpm, lp, h)
        n, s, _ = x.shape
        mem_int = pallas_layer_norm(x.reshape(n * s, d),
                                    params["enc_norm_g"],
                                    params["enc_norm_b"]).reshape(n, s, d)
        memory_out = jnp.transpose(mem_int, (1, 0, 2))        # (S, N, d) seq-first
    else:
        mem_int = jnp.transpose(memory, (1, 0, 2)).astype(_ACT_DTYPE)
        memory_out = memory

    y = jnp.take(params["dec_emb"], tgt.T, axis=0) * math.sqrt(d)      # (N,T,d)
    y = (y + pe[: tgt.shape[0]][None, :, :]).astype(_ACT_DTYPE)
    for lp in params["dec_layers"]:
        y = pallas_decoder_layer(y, mem_int, am, tgt_kpm, mem_kpm, lp, h)
    n, t, _ = y.shape
    y = pallas_layer_norm(y.reshape(n * t, d), params["dec_norm_g"],
                          params["dec_norm_b"]).reshape(n, t, d)

    if only_return_last_col:
        y = y[:, -1:, :]
        t = 1
    logits = pallas_vocab_proj(y.reshape(n * t, d),
                               params["lin_w"], params["lin_b"])
    logits = logits.reshape(n, t, -1).transpose(1, 0, 2)                # (T,N,V)
    return logits, memory_out


# ----------------------------------------------------------------------------
# Deterministic parameter initialisation (xavier_uniform for dim>1, zero bias)
# ----------------------------------------------------------------------------
def _xavier(key, shape):
    fan_out, fan_in = shape[0], shape[1]
    lim = math.sqrt(6.0 / (fan_in + fan_out))
    return jax.random.uniform(key, shape, jnp.float32, -lim, lim)


def _positional_encoding(max_len, d_model):
    pe = np.zeros((max_len, d_model), dtype=np.float64)
    position = np.arange(0, max_len, dtype=np.float64)[:, None]
    div_term = np.exp(np.arange(0, d_model, 2, dtype=np.float64)
                      * (-math.log(10000.0) / d_model))
    pe[:, 0::2] = np.sin(position * div_term)
    pe[:, 1::2] = np.cos(position * div_term)
    return jnp.asarray(pe, dtype=jnp.float32)


def init_params(key, d_model, nhead, num_encoder_layers, num_decoder_layers,
                dim_feedforward, src_vocab_size, tgt_vocab_size, max_len=512):
    assert d_model % nhead == 0
    dh = d_model // nhead
    keys = iter(jax.random.split(key, 256))
    wdt = _MXU_DTYPE   # matmul weights stored bf16 (f32 accumulation in-kernel)

    def attn_params():
        in_w = _xavier(next(keys), (3 * d_model, d_model))
        out_w = _xavier(next(keys), (d_model, d_model))
        # one-time host-side re-layout into per-head blocks (see _mha):
        #   wqkv[k*H + h] = in_proj_weight rows for (q|k|v, head h)  -> (dh, d)
        #   wout_h[h]     = out_proj_weight columns for head h       -> (d, dh)
        return {
            "wqkv": in_w.reshape(3 * nhead, dh, d_model).astype(wdt),
            "bqkv": jnp.zeros((3 * nhead, 1, dh), jnp.float32),
            "wout_h": out_w.reshape(d_model, nhead, dh)
                           .transpose(1, 0, 2).astype(wdt),
            "bout": jnp.zeros((1, d_model), jnp.float32),
        }

    def ffn_and_norms(n_norms):
        p = {
            "lin1_w": _xavier(next(keys), (dim_feedforward, d_model)).astype(wdt),
            "lin1_b": jnp.zeros((1, dim_feedforward), jnp.float32),
            "lin2_w": _xavier(next(keys), (d_model, dim_feedforward)).astype(wdt),
            "lin2_b": jnp.zeros((1, d_model), jnp.float32),
        }
        for i in range(1, n_norms + 1):
            p[f"norm{i}_g"] = jnp.ones((1, d_model), jnp.float32)
            p[f"norm{i}_b"] = jnp.zeros((1, d_model), jnp.float32)
        return p

    enc_layers = []
    for _ in range(num_encoder_layers):
        lp = {"self_attn": attn_params()}
        lp.update(ffn_and_norms(2))
        enc_layers.append(lp)

    dec_layers = []
    for _ in range(num_decoder_layers):
        lp = {"self_attn": attn_params(), "cross_attn": attn_params()}
        lp.update(ffn_and_norms(3))
        dec_layers.append(lp)

    return {
        "d_model": d_model,
        "nhead": nhead,
        "pe": _positional_encoding(max_len, d_model),
        "enc_emb": _xavier(next(keys), (src_vocab_size, d_model)),
        "dec_emb": _xavier(next(keys), (tgt_vocab_size, d_model)),
        "enc_layers": enc_layers,
        "dec_layers": dec_layers,
        "enc_norm_g": jnp.ones((1, d_model), jnp.float32),
        "enc_norm_b": jnp.zeros((1, d_model), jnp.float32),
        "dec_norm_g": jnp.ones((1, d_model), jnp.float32),
        "dec_norm_b": jnp.zeros((1, d_model), jnp.float32),
        "lin_w": _xavier(next(keys), (tgt_vocab_size, d_model)).astype(wdt),
        "lin_b": jnp.zeros((1, tgt_vocab_size), jnp.float32),
    }


# ----------------------------------------------------------------------------
if __name__ == "__main__":
    # lane-dense small config: d_model / ff / vocab are multiples of 128
    d_model, nhead = 128, 4
    num_encoder_layers, num_decoder_layers = 2, 2
    dim_feedforward = 256
    src_vocab_size, tgt_vocab_size = 128, 128
    S, T, N = 8, 8, 2   # src len, tgt len, batch

    root = jax.random.PRNGKey(0)
    k_param, k_src, k_tgt = jax.random.split(root, 3)

    params = init_params(k_param, d_model, nhead, num_encoder_layers,
                         num_decoder_layers, dim_feedforward,
                         src_vocab_size, tgt_vocab_size)

    src = jax.random.randint(k_src, (S, N), 0, src_vocab_size, dtype=jnp.int32)
    tgt = jax.random.randint(k_tgt, (T, N), 0, tgt_vocab_size, dtype=jnp.int32)

    # causal target mask (additive), like Transformer.generate_square_subsequent_mask
    causal = jnp.where(jnp.triu(jnp.ones((T, T), jnp.bool_), k=1),
                       _NEG_INF, 0.0).astype(jnp.float32)
    # mark last src position of batch element 1 as padding
    src_kpm = jnp.zeros((N, S), jnp.bool_).at[1, S - 1].set(True)

    out, memory = transformer_forward(params, src, tgt,
                                      src_key_padding_mask=src_kpm,
                                      tgt_mask=causal,
                                      memory_key_padding_mask=src_kpm)
    jax.block_until_ready((out, memory))
    assert out.shape == (T, N, tgt_vocab_size)
    assert memory.shape == (S, N, d_model)
    assert bool(jnp.all(jnp.isfinite(out)))
    assert bool(jnp.all(jnp.isfinite(memory.astype(jnp.float32))))

    # memory-reuse + only_return_last_col path (policy-rollout usage)
    out2, _ = transformer_forward(params, src, tgt, tgt_mask=causal,
                                  memory=memory,
                                  memory_key_padding_mask=src_kpm,
                                  only_return_last_col=True)
    jax.block_until_ready(out2)
    assert out2.shape == (1, N, tgt_vocab_size)
    assert bool(jnp.all(jnp.isfinite(out2)))

    print("KERNEL_OK")
</pallas_src>

<mosaic_0001>
module attributes {stable_mosaic.version = 11 : i64} {
  func.func @k(%arg0: i32, %arg1: memref<8x128xf32, #tpu.memory_space<vmem>>, %arg2: memref<8x128xf32, #tpu.memory_space<vmem>>) attributes {dimension_semantics = [#tpu.dimension_semantics<arbitrary>], iteration_bounds = array<i64: 1>, scalar_prefetch = 0 : i64, scratch_operands = 0 : i64, tpu.core_type = #tpu.core_type<tc>, window_params = [{pipeline_mode = #tpu.pipeline_mode<synchronous>, transform_indices = @transform_0, window_bounds = array<i64: 8, 128>}, {pipeline_mode = #tpu.pipeline_mode<synchronous>, transform_indices = @transform_1, window_bounds = array<i64: 8, 128>}]} {
    %c0 = arith.constant 0 : index
    %c0_0 = arith.constant 0 : index
    %0 = vector.load %arg1[%c0, %c0_0] : memref<8x128xf32, #tpu.memory_space<vmem>>, vector<8x128xf32>
    %cst = arith.constant 1.000000e+00 : f32
    %1 = vector.broadcast %cst : f32 to vector<8x128xf32>
    %2 = arith.addf %0, %1 : vector<8x128xf32>
    %c0_1 = arith.constant 0 : index
    %c0_2 = arith.constant 0 : index
    %3 = vector.load %arg2[%c0_1, %c0_2] : memref<8x128xf32, #tpu.memory_space<vmem>>, vector<8x128xf32>
    tpu.vector_store %arg2[%c0_1, %c0_2], %2 {strides = array<i32>} : memref<8x128xf32, #tpu.memory_space<vmem>>, vector<8x128xf32>,
    return
  }
  func.func @transform_0(%arg0: i32) -> (i32, i32) {
    %c0_i32 = arith.constant 0 : i32
    %c0_i32_0 = arith.constant 0 : i32
    %c0_i32_1 = arith.constant 0 : i32
    return %c0_i32, %c0_i32_0 : i32, i32
  }
  func.func @transform_1(%arg0: i32) -> (i32, i32) {
    %c0_i32 = arith.constant 0 : i32
    %c0_i32_0 = arith.constant 0 : i32
    %c0_i32_1 = arith.constant 0 : i32
    return %c0_i32, %c0_i32_0 : i32, i32
  }
}

module attributes {stable_mosaic.version = 11 : i64} {
  func.func @_encoder_layer_kernel(%arg0: i32, %arg1: memref<1x8x128xbf16, #tpu.memory_space<vmem>>, %arg2: memref<1x1x8xf32, #tpu.memory_space<vmem>>, %arg3: memref<12x32x128xbf16, #tpu.memory_space<vmem>>, %arg4: memref<12x1x32xf32, #tpu.memory_space<vmem>>, %arg5: memref<4x128x32xbf16, #tpu.memory_space<vmem>>, %arg6: memref<1x128xf32, #tpu.memory_space<vmem>>, %arg7: memref<1x128xf32, #tpu.memory_space<vmem>>, %arg8: memref<1x128xf32, #tpu.memory_space<vmem>>, %arg9: memref<256x128xbf16, #tpu.memory_space<vmem>>, %arg10: memref<1x256xf32, #tpu.memory_space<vmem>>, %arg11: memref<128x256xbf16, #tpu.memory_space<vmem>>, %arg12: memref<1x128xf32, #tpu.memory_space<vmem>>, %arg13: memref<1x128xf32, #tpu.memory_space<vmem>>, %arg14: memref<1x128xf32, #tpu.memory_space<vmem>>, %arg15: memref<1x8x128xbf16, #tpu.memory_space<vmem>>) attributes {dimension_semantics = [#tpu.dimension_semantics<parallel>], iteration_bounds = array<i64: 2>, scalar_prefetch = 0 : i64, scratch_operands = 0 : i64, tpu.core_type = #tpu.core_type<tc>, window_params = [{transform_indices = @transform_0, window_bounds = array<i64: 1, 8, 128>}, {transform_indices = @transform_1, window_bounds = array<i64: 1, 1, 8>}, {pipeline_mode = #tpu.pipeline_mode<synchronous>, transform_indices = @transform_2, window_bounds = array<i64: 12, 32, 128>}, {pipeline_mode = #tpu.pipeline_mode<synchronous>, transform_indices = @transform_3, window_bounds = array<i64: 12, 1, 32>}, {pipeline_mode = #tpu.pipeline_mode<synchronous>, transform_indices = @transform_4, window_bounds = array<i64: 4, 128, 32>}, {pipeline_mode = #tpu.pipeline_mode<synchronous>, transform_indices = @transform_5, window_bounds = array<i64: 1, 128>}, {pipeline_mode = #tpu.pipeline_mode<synchronous>, transform_indices = @transform_6, window_bounds = array<i64: 1, 128>}, {pipeline_mode = #tpu.pipeline_mode<synchronous>, transform_indices = @transform_7, window_bounds = array<i64: 1, 128>}, {pipeline_mode = #tpu.pipeline_mode<synchronous>, transform_indices = @transform_8, window_bounds = array<i64: 256, 128>}, {pipeline_mode = #tpu.pipeline_mode<synchronous>, transform_indices = @transform_9, window_bounds = array<i64: 1, 256>}, {pipeline_mode = #tpu.pipeline_mode<synchronous>, transform_indices = @transform_10, window_bounds = array<i64: 128, 256>}, {pipeline_mode = #tpu.pipeline_mode<synchronous>, transform_indices = @transform_11, window_bounds = array<i64: 1, 128>}, {pipeline_mode = #tpu.pipeline_mode<synchronous>, transform_indices = @transform_12, window_bounds = array<i64: 1, 128>}, {pipeline_mode = #tpu.pipeline_mode<synchronous>, transform_indices = @transform_13, window_bounds = array<i64: 1, 128>}, {transform_indices = @transform_14, window_bounds = array<i64: 1, 8, 128>}]} {
    %c0 = arith.constant 0 : index
    %c0_0 = arith.constant 0 : index
    %c0_1 = arith.constant 0 : index
    %0 = vector.load %arg1[%c0, %c0_0, %c0_1] : memref<1x8x128xbf16, #tpu.memory_space<vmem>>, vector<1x8x128xbf16>
    %1 = vector.shape_cast %0 : vector<1x8x128xbf16> to vector<8x128xbf16>
    %c0_2 = arith.constant 0 : index
    %c0_3 = arith.constant 0 : index
    %c0_4 = arith.constant 0 : index
    %2 = vector.load %arg2[%c0_2, %c0_3, %c0_4] : memref<1x1x8xf32, #tpu.memory_space<vmem>>, vector<1x1x8xf32>
    %3 = vector.shape_cast %2 : vector<1x1x8xf32> to vector<1x8xf32>
    %c0_5 = arith.constant 0 : index
    %c0_6 = arith.constant 0 : index
    %c0_7 = arith.constant 0 : index
    %4 = vector.load %arg3[%c0_5, %c0_6, %c0_7] : memref<12x32x128xbf16, #tpu.memory_space<vmem>>, vector<1x32x128xbf16>
    %5 = vector.shape_cast %4 : vector<1x32x128xbf16> to vector<32x128xbf16>
    %cst = arith.constant dense<0.000000e+00> : vector<8x32xf32>
    %6 = tpu.matmul %1, %5, %cst {dimension_numbers = #tpu.dot_dimension_numbers<[1], [1], [0], [0], [0, 0, 1, 0], [], []>} : vector<8x128xbf16>, vector<32x128xbf16>, vector<8x32xf32> -> vector<8x32xf32>
    %c0_8 = arith.constant 0 : index
    %c0_9 = arith.constant 0 : index
    %c0_10 = arith.constant 0 : index
    %7 = vector.load %arg4[%c0_8, %c0_9, %c0_10] : memref<12x1x32xf32, #tpu.memory_space<vmem>>, vector<1x1x32xf32>
    %8 = vector.shape_cast %7 : vector<1x1x32xf32> to vector<1x32xf32>
    %9 = vector.broadcast %8 : vector<1x32xf32> to vector<8x32xf32>
    %10 = arith.addf %6, %9 : vector<8x32xf32>
    %c4 = arith.constant 4 : index
    %c0_11 = arith.constant 0 : index
    %c0_12 = arith.constant 0 : index
    %11 = vector.load %arg3[%c4, %c0_11, %c0_12] : memref<12x32x128xbf16, #tpu.memory_space<vmem>>, vector<1x32x128xbf16>
    %12 = vector.shape_cast %11 : vector<1x32x128xbf16> to vector<32x128xbf16>
    %cst_13 = arith.constant dense<0.000000e+00> : vector<8x32xf32>
    %13 = tpu.matmul %1, %12, %cst_13 {dimension_numbers = #tpu.dot_dimension_numbers<[1], [1], [0], [0], [0, 0, 1, 0], [], []>} : vector<8x128xbf16>, vector<32x128xbf16>, vector<8x32xf32> -> vector<8x32xf32>
    %c4_14 = arith.constant 4 : index
    %c0_15 = arith.constant 0 : index
    %c0_16 = arith.constant 0 : index
    %14 = vector.load %arg4[%c4_14, %c0_15, %c0_16] : memref<12x1x32xf32, #tpu.memory_space<vmem>>, vector<1x1x32xf32>
    %15 = vector.shape_cast %14 : vector<1x1x32xf32> to vector<1x32xf32>
    %16 = vector.broadcast %15 : vector<1x32xf32> to vector<8x32xf32>
    %17 = arith.addf %13, %16 : vector<8x32xf32>
    %c8 = arith.constant 8 : index
    %c0_17 = arith.constant 0 : index
    %c0_18 = arith.constant 0 : index
    %18 = vector.load %arg3[%c8, %c0_17, %c0_18] : memref<12x32x128xbf16, #tpu.memory_space<vmem>>, vector<1x32x128xbf16>
    %19 = vector.shape_cast %18 : vector<1x32x128xbf16> to vector<32x128xbf16>
    %cst_19 = arith.constant dense<0.000000e+00> : vector<8x32xf32>
    %20 = tpu.matmul %1, %19, %cst_19 {dimension_numbers = #tpu.dot_dimension_numbers<[1], [1], [0], [0], [0, 0, 1, 0], [], []>} : vector<8x128xbf16>, vector<32x128xbf16>, vector<8x32xf32> -> vector<8x32xf32>
    %c8_20 = arith.constant 8 : index
    %c0_21 = arith.constant 0 : index
    %c0_22 = arith.constant 0 : index
    %21 = vector.load %arg4[%c8_20, %c0_21, %c0_22] : memref<12x1x32xf32, #tpu.memory_space<vmem>>, vector<1x1x32xf32>
    %22 = vector.shape_cast %21 : vector<1x1x32xf32> to vector<1x32xf32>
    %23 = vector.broadcast %22 : vector<1x32xf32> to vector<8x32xf32>
    %24 = arith.addf %20, %23 : vector<8x32xf32>
    %25 = arith.truncf %10 : vector<8x32xf32> to vector<8x32xbf16>
    %26 = arith.truncf %17 : vector<8x32xf32> to vector<8x32xbf16>
    %cst_23 = arith.constant dense<0.000000e+00> : vector<8x8xf32>
    %27 = tpu.matmul %25, %26, %cst_23 {dimension_numbers = #tpu.dot_dimension_numbers<[1], [1], [0], [0], [0, 0, 1, 0], [], []>} : vector<8x32xbf16>, vector<8x32xbf16>, vector<8x8xf32> -> vector<8x8xf32>
    %cst_24 = arith.constant 0.176776692 : f32
    %28 = vector.broadcast %cst_24 : f32 to vector<8x8xf32>
    %29 = arith.mulf %27, %28 : vector<8x8xf32>
    %30 = vector.broadcast %3 : vector<1x8xf32> to vector<8x8xf32>
    %31 = arith.addf %29, %30 : vector<8x8xf32>
    %cst_25 = arith.constant dense<0xFF800000> : vector<8xf32>
    %32 = vector.multi_reduction <maximumf>, %31, %cst_25 [1] : vector<8x8xf32> to vector<8xf32>
    %33 = vector.shape_cast %32 : vector<8xf32> to vector<8x1xf32>
    %34 = vector.broadcast %33 : vector<8x1xf32> to vector<8x8xf32>
    %35 = arith.subf %31, %34 : vector<8x8xf32>
    %36 = math.exp %35 : vector<8x8xf32>
    %cst_26 = arith.constant dense<0.000000e+00> : vector<8xf32>
    %37 = vector.multi_reduction <add>, %36, %cst_26 [1] : vector<8x8xf32> to vector<8xf32>
    %38 = vector.shape_cast %37 : vector<8xf32> to vector<8x1xf32>
    %39 = arith.truncf %36 : vector<8x8xf32> to vector<8x8xbf16>
    %40 = arith.truncf %24 : vector<8x32xf32> to vector<8x32xbf16>
    %cst_27 = arith.constant dense<0.000000e+00> : vector<8x32xf32>
    %41 = tpu.matmul %39, %40, %cst_27 {dimension_numbers = #tpu.dot_dimension_numbers<[1], [0], [0], [1], [0, 0, 1, 1], [], []>} : vector<8x8xbf16>, vector<8x32xbf16>, vector<8x32xf32> -> vector<8x32xf32>
    %42 = tpu.reciprocal %38 {approx = true} : vector<8x1xf32> -> vector<8x1xf32>
    %43 = vector.broadcast %42 : vector<8x1xf32> to vector<8x32xf32>
    %44 = arith.mulf %41, %43 : vector<8x32xf32>
    %45 = arith.truncf %44 : vector<8x32xf32> to vector<8x32xbf16>
    %c0_28 = arith.constant 0 : index
    %c0_29 = arith.constant 0 : index
    %c0_30 = arith.constant 0 : index
    %46 = vector.load %arg5[%c0_28, %c0_29, %c0_30] : memref<4x128x32xbf16, #tpu.memory_space<vmem>>, vector<1x128x32xbf16>
    %47 = vector.shape_cast %46 : vector<1x128x32xbf16> to vector<128x32xbf16>
    %cst_31 = arith.constant dense<0.000000e+00> : vector<8x128xf32>
    %48 = tpu.matmul %45, %47, %cst_31 {dimension_numbers = #tpu.dot_dimension_numbers<[1], [1], [0], [0], [0, 0, 1, 0], [], []>} : vector<8x32xbf16>, vector<128x32xbf16>, vector<8x128xf32> -> vector<8x128xf32>
    %c1 = arith.constant 1 : index
    %c0_32 = arith.constant 0 : index
    %c0_33 = arith.constant 0 : index
    %49 = vector.load %arg3[%c1, %c0_32, %c0_33] : memref<12x32x128xbf16, #tpu.memory_space<vmem>>, vector<1x32x128xbf16>
    %50 = vector.shape_cast %49 : vector<1x32x128xbf16> to vector<32x128xbf16>
    %cst_34 = arith.constant dense<0.000000e+00> : vector<8x32xf32>
    %51 = tpu.matmul %1, %50, %cst_34 {dimension_numbers = #tpu.dot_dimension_numbers<[1], [1], [0], [0], [0, 0, 1, 0], [], []>} : vector<8x128xbf16>, vector<32x128xbf16>, vector<8x32xf32> -> vector<8x32xf32>
    %c1_35 = arith.constant 1 : index
    %c0_36 = arith.constant 0 : index
    %c0_37 = arith.constant 0 : index
    %52 = vector.load %arg4[%c1_35, %c0_36, %c0_37] : memref<12x1x32xf32, #tpu.memory_space<vmem>>, vector<1x1x32xf32>
    %53 = vector.shape_cast %52 : vector<1x1x32xf32> to vector<1x32xf32>
    %54 = vector.broadcast %53 : vector<1x32xf32> to vector<8x32xf32>
    %55 = arith.addf %51, %54 : vector<8x32xf32>
    %c5 = arith.constant 5 : index
    %c0_38 = arith.constant 0 : index
    %c0_39 = arith.constant 0 : index
    %56 = vector.load %arg3[%c5, %c0_38, %c0_39] : memref<12x32x128xbf16, #tpu.memory_space<vmem>>, vector<1x32x128xbf16>
    %57 = vector.shape_cast %56 : vector<1x32x128xbf16> to vector<32x128xbf16>
    %cst_40 = arith.constant dense<0.000000e+00> : vector<8x32xf32>
    %58 = tpu.matmul %1, %57, %cst_40 {dimension_numbers = #tpu.dot_dimension_numbers<[1], [1], [0], [0], [0, 0, 1, 0], [], []>} : vector<8x128xbf16>, vector<32x128xbf16>, vector<8x32xf32> -> vector<8x32xf32>
    %c5_41 = arith.constant 5 : index
    %c0_42 = arith.constant 0 : index
    %c0_43 = arith.constant 0 : index
    %59 = vector.load %arg4[%c5_41, %c0_42, %c0_43] : memref<12x1x32xf32, #tpu.memory_space<vmem>>, vector<1x1x32xf32>
    %60 = vector.shape_cast %59 : vector<1x1x32xf32> to vector<1x32xf32>
    %61 = vector.broadcast %60 : vector<1x32xf32> to vector<8x32xf32>
    %62 = arith.addf %58, %61 : vector<8x32xf32>
    %c9 = arith.constant 9 : index
    %c0_44 = arith.constant 0 : index
    %c0_45 = arith.constant 0 : index
    %63 = vector.load %arg3[%c9, %c0_44, %c0_45] : memref<12x32x128xbf16, #tpu.memory_space<vmem>>, vector<1x32x128xbf16>
    %64 = vector.shape_cast %63 : vector<1x32x128xbf16> to vector<32x128xbf16>
    %cst_46 = arith.constant dense<0.000000e+00> : vector<8x32xf32>
    %65 = tpu.matmul %1, %64, %cst_46 {dimension_numbers = #tpu.dot_dimension_numbers<[1], [1], [0], [0], [0, 0, 1, 0], [], []>} : vector<8x128xbf16>, vector<32x128xbf16>, vector<8x32xf32> -> vector<8x32xf32>
    %c9_47 = arith.constant 9 : index
    %c0_48 = arith.constant 0 : index
    %c0_49 = arith.constant 0 : index
    %66 = vector.load %arg4[%c9_47, %c0_48, %c0_49] : memref<12x1x32xf32, #tpu.memory_space<vmem>>, vector<1x1x32xf32>
    %67 = vector.shape_cast %66 : vector<1x1x32xf32> to vector<1x32xf32>
    %68 = vector.broadcast %67 : vector<1x32xf32> to vector<8x32xf32>
    %69 = arith.addf %65, %68 : vector<8x32xf32>
    %70 = arith.truncf %55 : vector<8x32xf32> to vector<8x32xbf16>
    %71 = arith.truncf %62 : vector<8x32xf32> to vector<8x32xbf16>
    %cst_50 = arith.constant dense<0.000000e+00> : vector<8x8xf32>
    %72 = tpu.matmul %70, %71, %cst_50 {dimension_numbers = #tpu.dot_dimension_numbers<[1], [1], [0], [0], [0, 0, 1, 0], [], []>} : vector<8x32xbf16>, vector<8x32xbf16>, vector<8x8xf32> -> vector<8x8xf32>
    %cst_51 = arith.constant 0.176776692 : f32
    %73 = vector.broadcast %cst_51 : f32 to vector<8x8xf32>
    %74 = arith.mulf %72, %73 : vector<8x8xf32>
    %75 = vector.broadcast %3 : vector<1x8xf32> to vector<8x8xf32>
    %76 = arith.addf %74, %75 : vector<8x8xf32>
    %cst_52 = arith.constant dense<0xFF800000> : vector<8xf32>
    %77 = vector.multi_reduction <maximumf>, %76, %cst_52 [1] : vector<8x8xf32> to vector<8xf32>
    %78 = vector.shape_cast %77 : vector<8xf32> to vector<8x1xf32>
    %79 = vector.broadcast %78 : vector<8x1xf32> to vector<8x8xf32>
    %80 = arith.subf %76, %79 : vector<8x8xf32>
    %81 = math.exp %80 : vector<8x8xf32>
    %cst_53 = arith.constant dense<0.000000e+00> : vector<8xf32>
    %82 = vector.multi_reduction <add>, %81, %cst_53 [1] : vector<8x8xf32> to vector<8xf32>
    %83 = vector.shape_cast %82 : vector<8xf32> to vector<8x1xf32>
    %84 = arith.truncf %81 : vector<8x8xf32> to vector<8x8xbf16>
    %85 = arith.truncf %69 : vector<8x32xf32> to vector<8x32xbf16>
    %cst_54 = arith.constant dense<0.000000e+00> : vector<8x32xf32>
    %86 = tpu.matmul %84, %85, %cst_54 {dimension_numbers = #tpu.dot_dimension_numbers<[1], [0], [0], [1], [0, 0, 1, 1], [], []>} : vector<8x8xbf16>, vector<8x32xbf16>, vector<8x32xf32> -> vector<8x32xf32>
    %87 = tpu.reciprocal %83 {approx = true} : vector<8x1xf32> -> vector<8x1xf32>
    %88 = vector.broadcast %87 : vector<8x1xf32> to vector<8x32xf32>
    %89 = arith.mulf %86, %88 : vector<8x32xf32>
    %90 = arith.truncf %89 : vector<8x32xf32> to vector<8x32xbf16>
    %c1_55 = arith.constant 1 : index
    %c0_56 = arith.constant 0 : index
    %c0_57 = arith.constant 0 : index
    %91 = vector.load %arg5[%c1_55, %c0_56, %c0_57] : memref<4x128x32xbf16, #tpu.memory_space<vmem>>, vector<1x128x32xbf16>
    %92 = vector.shape_cast %91 : vector<1x128x32xbf16> to vector<128x32xbf16>
    %cst_58 = arith.constant dense<0.000000e+00> : vector<8x128xf32>
    %93 = tpu.matmul %90, %92, %cst_58 {dimension_numbers = #tpu.dot_dimension_numbers<[1], [1], [0], [0], [0, 0, 1, 0], [], []>} : vector<8x32xbf16>, vector<128x32xbf16>, vector<8x128xf32> -> vector<8x128xf32>
    %94 = arith.addf %48, %93 : vector<8x128xf32>
    %c2 = arith.constant 2 : index
    %c0_59 = arith.constant 0 : index
    %c0_60 = arith.constant 0 : index
    %95 = vector.load %arg3[%c2, %c0_59, %c0_60] : memref<12x32x128xbf16, #tpu.memory_space<vmem>>, vector<1x32x128xbf16>
    %96 = vector.shape_cast %95 : vector<1x32x128xbf16> to vector<32x128xbf16>
    %cst_61 = arith.constant dense<0.000000e+00> : vector<8x32xf32>
    %97 = tpu.matmul %1, %96, %cst_61 {dimension_numbers = #tpu.dot_dimension_numbers<[1], [1], [0], [0], [0, 0, 1, 0], [], []>} : vector<8x128xbf16>, vector<32x128xbf16>, vector<8x32xf32> -> vector<8x32xf32>
    %c2_62 = arith.constant 2 : index
    %c0_63 = arith.constant 0 : index
    %c0_64 = arith.constant 0 : index
    %98 = vector.load %arg4[%c2_62, %c0_63, %c0_64] : memref<12x1x32xf32, #tpu.memory_space<vmem>>, vector<1x1x32xf32>
    %99 = vector.shape_cast %98 : vector<1x1x32xf32> to vector<1x32xf32>
    %100 = vector.broadcast %99 : vector<1x32xf32> to vector<8x32xf32>
    %101 = arith.addf %97, %100 : vector<8x32xf32>
    %c6 = arith.constant 6 : index
    %c0_65 = arith.constant 0 : index
    %c0_66 = arith.constant 0 : index
    %102 = vector.load %arg3[%c6, %c0_65, %c0_66] : memref<12x32x128xbf16, #tpu.memory_space<vmem>>, vector<1x32x128xbf16>
    %103 = vector.shape_cast %102 : vector<1x32x128xbf16> to vector<32x128xbf16>
    %cst_67 = arith.constant dense<0.000000e+00> : vector<8x32xf32>
    %104 = tpu.matmul %1, %103, %cst_67 {dimension_numbers = #tpu.dot_dimension_numbers<[1], [1], [0], [0], [0, 0, 1, 0], [], []>} : vector<8x128xbf16>, vector<32x128xbf16>, vector<8x32xf32> -> vector<8x32xf32>
    %c6_68 = arith.constant 6 : index
    %c0_69 = arith.constant 0 : index
    %c0_70 = arith.constant 0 : index
    %105 = vector.load %arg4[%c6_68, %c0_69, %c0_70] : memref<12x1x32xf32, #tpu.memory_space<vmem>>, vector<1x1x32xf32>
    %106 = vector.shape_cast %105 : vector<1x1x32xf32> to vector<1x32xf32>
    %107 = vector.broadcast %106 : vector<1x32xf32> to vector<8x32xf32>
    %108 = arith.addf %104, %107 : vector<8x32xf32>
    %c10 = arith.constant 10 : index
    %c0_71 = arith.constant 0 : index
    %c0_72 = arith.constant 0 : index
    %109 = vector.load %arg3[%c10, %c0_71, %c0_72] : memref<12x32x128xbf16, #tpu.memory_space<vmem>>, vector<1x32x128xbf16>
    %110 = vector.shape_cast %109 : vector<1x32x128xbf16> to vector<32x128xbf16>
    %cst_73 = arith.constant dense<0.000000e+00> : vector<8x32xf32>
    %111 = tpu.matmul %1, %110, %cst_73 {dimension_numbers = #tpu.dot_dimension_numbers<[1], [1], [0], [0], [0, 0, 1, 0], [], []>} : vector<8x128xbf16>, vector<32x128xbf16>, vector<8x32xf32> -> vector<8x32xf32>
    %c10_74 = arith.constant 10 : index
    %c0_75 = arith.constant 0 : index
    %c0_76 = arith.constant 0 : index
    %112 = vector.load %arg4[%c10_74, %c0_75, %c0_76] : memref<12x1x32xf32, #tpu.memory_space<vmem>>, vector<1x1x32xf32>
    %113 = vector.shape_cast %112 : vector<1x1x32xf32> to vector<1x32xf32>
    %114 = vector.broadcast %113 : vector<1x32xf32> to vector<8x32xf32>
    %115 = arith.addf %111, %114 : vector<8x32xf32>
    %116 = arith.truncf %101 : vector<8x32xf32> to vector<8x32xbf16>
    %117 = arith.truncf %108 : vector<8x32xf32> to vector<8x32xbf16>
    %cst_77 = arith.constant dense<0.000000e+00> : vector<8x8xf32>
    %118 = tpu.matmul %116, %117, %cst_77 {dimension_numbers = #tpu.dot_dimension_numbers<[1], [1], [0], [0], [0, 0, 1, 0], [], []>} : vector<8x32xbf16>, vector<8x32xbf16>, vector<8x8xf32> -> vector<8x8xf32>
    %cst_78 = arith.constant 0.176776692 : f32
    %119 = vector.broadcast %cst_78 : f32 to vector<8x8xf32>
    %120 = arith.mulf %118, %119 : vector<8x8xf32>
    %121 = vector.broadcast %3 : vector<1x8xf32> to vector<8x8xf32>
    %122 = arith.addf %120, %121 : vector<8x8xf32>
    %cst_79 = arith.constant dense<0xFF800000> : vector<8xf32>
    %123 = vector.multi_reduction <maximumf>, %122, %cst_79 [1] : vector<8x8xf32> to vector<8xf32>
    %124 = vector.shape_cast %123 : vector<8xf32> to vector<8x1xf32>
    %125 = vector.broadcast %124 : vector<8x1xf32> to vector<8x8xf32>
    %126 = arith.subf %122, %125 : vector<8x8xf32>
    %127 = math.exp %126 : vector<8x8xf32>
    %cst_80 = arith.constant dense<0.000000e+00> : vector<8xf32>
    %128 = vector.multi_reduction <add>, %127, %cst_80 [1] : vector<8x8xf32> to vector<8xf32>
    %129 = vector.shape_cast %128 : vector<8xf32> to vector<8x1xf32>
    %130 = arith.truncf %127 : vector<8x8xf32> to vector<8x8xbf16>
    %131 = arith.truncf %115 : vector<8x32xf32> to vector<8x32xbf16>
    %cst_81 = arith.constant dense<0.000000e+00> : vector<8x32xf32>
    %132 = tpu.matmul %130, %131, %cst_81 {dimension_numbers = #tpu.dot_dimension_numbers<[1], [0], [0], [1], [0, 0, 1, 1], [], []>} : vector<8x8xbf16>, vector<8x32xbf16>, vector<8x32xf32> -> vector<8x32xf32>
    %133 = tpu.reciprocal %129 {approx = true} : vector<8x1xf32> -> vector<8x1xf32>
    %134 = vector.broadcast %133 : vector<8x1xf32> to vector<8x32xf32>
    %135 = arith.mulf %132, %134 : vector<8x32xf32>
    %136 = arith.truncf %135 : vector<8x32xf32> to vector<8x32xbf16>
    %c2_82 = arith.constant 2 : index
    %c0_83 = arith.constant 0 : index
    %c0_84 = arith.constant 0 : index
    %137 = vector.load %arg5[%c2_82, %c0_83, %c0_84] : memref<4x128x32xbf16, #tpu.memory_space<vmem>>, vector<1x128x32xbf16>
    %138 = vector.shape_cast %137 : vector<1x128x32xbf16> to vector<128x32xbf16>
    %cst_85 = arith.constant dense<0.000000e+00> : vector<8x128xf32>
    %139 = tpu.matmul %136, %138, %cst_85 {dimension_numbers = #tpu.dot_dimension_numbers<[1], [1], [0], [0], [0, 0, 1, 0], [], []>} : vector<8x32xbf16>, vector<128x32xbf16>, vector<8x128xf32> -> vector<8x128xf32>
    %140 = arith.addf %94, %139 : vector<8x128xf32>
    %c3 = arith.constant 3 : index
    %c0_86 = arith.constant 0 : index
    %c0_87 = arith.constant 0 : index
    %141 = vector.load %arg3[%c3, %c0_86, %c0_87] : memref<12x32x128xbf16, #tpu.memory_space<vmem>>, vector<1x32x128xbf16>
    %142 = vector.shape_cast %141 : vector<1x32x128xbf16> to vector<32x128xbf16>
    %cst_88 = arith.constant dense<0.000000e+00> : vector<8x32xf32>
    %143 = tpu.matmul %1, %142, %cst_88 {dimension_numbers = #tpu.dot_dimension_numbers<[1], [1], [0], [0], [0, 0, 1, 0], [], []>} : vector<8x128xbf16>, vector<32x128xbf16>, vector<8x32xf32> -> vector<8x32xf32>
    %c3_89 = arith.constant 3 : index
    %c0_90 = arith.constant 0 : index
    %c0_91 = arith.constant 0 : index
    %144 = vector.load %arg4[%c3_89, %c0_90, %c0_91] : memref<12x1x32xf32, #tpu.memory_space<vmem>>, vector<1x1x32xf32>
    %145 = vector.shape_cast %144 : vector<1x1x32xf32> to vector<1x32xf32>
    %146 = vector.broadcast %145 : vector<1x32xf32> to vector<8x32xf32>
    %147 = arith.addf %143, %146 : vector<8x32xf32>
    %c7 = arith.constant 7 : index
    %c0_92 = arith.constant 0 : index
    %c0_93 = arith.constant 0 : index
    %148 = vector.load %arg3[%c7, %c0_92, %c0_93] : memref<12x32x128xbf16, #tpu.memory_space<vmem>>, vector<1x32x128xbf16>
    %149 = vector.shape_cast %148 : vector<1x32x128xbf16> to vector<32x128xbf16>
    %cst_94 = arith.constant dense<0.000000e+00> : vector<8x32xf32>
    %150 = tpu.matmul %1, %149, %cst_94 {dimension_numbers = #tpu.dot_dimension_numbers<[1], [1], [0], [0], [0, 0, 1, 0], [], []>} : vector<8x128xbf16>, vector<32x128xbf16>, vector<8x32xf32> -> vector<8x32xf32>
    %c7_95 = arith.constant 7 : index
    %c0_96 = arith.constant 0 : index
    %c0_97 = arith.constant 0 : index
    %151 = vector.load %arg4[%c7_95, %c0_96, %c0_97] : memref<12x1x32xf32, #tpu.memory_space<vmem>>, vector<1x1x32xf32>
    %152 = vector.shape_cast %151 : vector<1x1x32xf32> to vector<1x32xf32>
    %153 = vector.broadcast %152 : vector<1x32xf32> to vector<8x32xf32>
    %154 = arith.addf %150, %153 : vector<8x32xf32>
    %c11 = arith.constant 11 : index
    %c0_98 = arith.constant 0 : index
    %c0_99 = arith.constant 0 : index
    %155 = vector.load %arg3[%c11, %c0_98, %c0_99] : memref<12x32x128xbf16, #tpu.memory_space<vmem>>, vector<1x32x128xbf16>
    %156 = vector.shape_cast %155 : vector<1x32x128xbf16> to vector<32x128xbf16>
    %cst_100 = arith.constant dense<0.000000e+00> : vector<8x32xf32>
    %157 = tpu.matmul %1, %156, %cst_100 {dimension_numbers = #tpu.dot_dimension_numbers<[1], [1], [0], [0], [0, 0, 1, 0], [], []>} : vector<8x128xbf16>, vector<32x128xbf16>, vector<8x32xf32> -> vector<8x32xf32>
    %c11_101 = arith.constant 11 : index
    %c0_102 = arith.constant 0 : index
    %c0_103 = arith.constant 0 : index
    %158 = vector.load %arg4[%c11_101, %c0_102, %c0_103] : memref<12x1x32xf32, #tpu.memory_space<vmem>>, vector<1x1x32xf32>
    %159 = vector.shape_cast %158 : vector<1x1x32xf32> to vector<1x32xf32>
    %160 = vector.broadcast %159 : vector<1x32xf32> to vector<8x32xf32>
    %161 = arith.addf %157, %160 : vector<8x32xf32>
    %162 = arith.truncf %147 : vector<8x32xf32> to vector<8x32xbf16>
    %163 = arith.truncf %154 : vector<8x32xf32> to vector<8x32xbf16>
    %cst_104 = arith.constant dense<0.000000e+00> : vector<8x8xf32>
    %164 = tpu.matmul %162, %163, %cst_104 {dimension_numbers = #tpu.dot_dimension_numbers<[1], [1], [0], [0], [0, 0, 1, 0], [], []>} : vector<8x32xbf16>, vector<8x32xbf16>, vector<8x8xf32> -> vector<8x8xf32>
    %cst_105 = arith.constant 0.176776692 : f32
    %165 = vector.broadcast %cst_105 : f32 to vector<8x8xf32>
    %166 = arith.mulf %164, %165 : vector<8x8xf32>
    %167 = vector.broadcast %3 : vector<1x8xf32> to vector<8x8xf32>
    %168 = arith.addf %166, %167 : vector<8x8xf32>
    %cst_106 = arith.constant dense<0xFF800000> : vector<8xf32>
    %169 = vector.multi_reduction <maximumf>, %168, %cst_106 [1] : vector<8x8xf32> to vector<8xf32>
    %170 = vector.shape_cast %169 : vector<8xf32> to vector<8x1xf32>
    %171 = vector.broadcast %170 : vector<8x1xf32> to vector<8x8xf32>
    %172 = arith.subf %168, %171 : vector<8x8xf32>
    %173 = math.exp %172 : vector<8x8xf32>
    %cst_107 = arith.constant dense<0.000000e+00> : vector<8xf32>
    %174 = vector.multi_reduction <add>, %173, %cst_107 [1] : vector<8x8xf32> to vector<8xf32>
    %175 = vector.shape_cast %174 : vector<8xf32> to vector<8x1xf32>
    %176 = arith.truncf %173 : vector<8x8xf32> to vector<8x8xbf16>
    %177 = arith.truncf %161 : vector<8x32xf32> to vector<8x32xbf16>
    %cst_108 = arith.constant dense<0.000000e+00> : vector<8x32xf32>
    %178 = tpu.matmul %176, %177, %cst_108 {dimension_numbers = #tpu.dot_dimension_numbers<[1], [0], [0], [1], [0, 0, 1, 1], [], []>} : vector<8x8xbf16>, vector<8x32xbf16>, vector<8x32xf32> -> vector<8x32xf32>
    %179 = tpu.reciprocal %175 {approx = true} : vector<8x1xf32> -> vector<8x1xf32>
    %180 = vector.broadcast %179 : vector<8x1xf32> to vector<8x32xf32>
    %181 = arith.mulf %178, %180 : vector<8x32xf32>
    %182 = arith.truncf %181 : vector<8x32xf32> to vector<8x32xbf16>
    %c3_109 = arith.constant 3 : index
    %c0_110 = arith.constant 0 : index
    %c0_111 = arith.constant 0 : index
    %183 = vector.load %arg5[%c3_109, %c0_110, %c0_111] : memref<4x128x32xbf16, #tpu.memory_space<vmem>>, vector<1x128x32xbf16>
    %184 = vector.shape_cast %183 : vector<1x128x32xbf16> to vector<128x32xbf16>
    %cst_112 = arith.constant dense<0.000000e+00> : vector<8x128xf32>
    %185 = tpu.matmul %182, %184, %cst_112 {dimension_numbers = #tpu.dot_dimension_numbers<[1], [1], [0], [0], [0, 0, 1, 0], [], []>} : vector<8x32xbf16>, vector<128x32xbf16>, vector<8x128xf32> -> vector<8x128xf32>
    %186 = arith.addf %140, %185 : vector<8x128xf32>
    %187 = arith.extf %1 : vector<8x128xbf16> to vector<8x128xf32>
    %188 = arith.addf %187, %186 : vector<8x128xf32>
    %c0_113 = arith.constant 0 : index
    %c0_114 = arith.constant 0 : index
    %189 = vector.load %arg6[%c0_113, %c0_114] : memref<1x128xf32, #tpu.memory_space<vmem>>, vector<1x128xf32>
    %190 = vector.broadcast %189 : vector<1x128xf32> to vector<8x128xf32>
    %191 = arith.addf %188, %190 : vector<8x128xf32>
    %c0_115 = arith.constant 0 : index
    %c0_116 = arith.constant 0 : index
    %192 = vector.load %arg7[%c0_115, %c0_116] : memref<1x128xf32, #tpu.memory_space<vmem>>, vector<1x128xf32>
    %c0_117 = arith.constant 0 : index
    %c0_118 = arith.constant 0 : index
    %193 = vector.load %arg8[%c0_117, %c0_118] : memref<1x128xf32, #tpu.memory_space<vmem>>, vector<1x128xf32>
    %cst_119 = arith.constant dense<0.000000e+00> : vector<8xf32>
    %194 = vector.multi_reduction <add>, %191, %cst_119 [1] : vector<8x128xf32> to vector<8xf32>
    %195 = vector.shape_cast %194 : vector<8xf32> to vector<8x1xf32>
    %cst_120 = arith.constant 1.280000e+02 : f32
    %196 = vector.broadcast %cst_120 : f32 to vector<8x1xf32>
    %197 = arith.divf %195, %196 : vector<8x1xf32>
    %198 = vector.broadcast %197 : vector<8x1xf32> to vector<8x128xf32>
    %199 = arith.subf %191, %198 : vector<8x128xf32>
    %200 = arith.mulf %199, %199 : vector<8x128xf32>
    %cst_121 = arith.constant dense<0.000000e+00> : vector<8xf32>
    %201 = vector.multi_reduction <add>, %200, %cst_121 [1] : vector<8x128xf32> to vector<8xf32>
    %202 = vector.shape_cast %201 : vector<8xf32> to vector<8x1xf32>
    %cst_122 = arith.constant 1.280000e+02 : f32
    %203 = vector.broadcast %cst_122 : f32 to vector<8x1xf32>
    %204 = arith.divf %202, %203 : vector<8x1xf32>
    %205 = vector.broadcast %197 : vector<8x1xf32> to vector<8x128xf32>
    %206 = arith.subf %191, %205 : vector<8x128xf32>
    %cst_123 = arith.constant 9.99999974E-6 : f32
    %207 = vector.broadcast %cst_123 : f32 to vector<8x1xf32>
    %208 = arith.addf %204, %207 : vector<8x1xf32>
    %209 = math.rsqrt %208 : vector<8x1xf32>
    %210 = vector.broadcast %209 : vector<8x1xf32> to vector<8x128xf32>
    %211 = arith.mulf %206, %210 : vector<8x128xf32>
    %212 = vector.broadcast %192 : vector<1x128xf32> to vector<8x128xf32>
    %213 = arith.mulf %211, %212 : vector<8x128xf32>
    %214 = vector.broadcast %193 : vector<1x128xf32> to vector<8x128xf32>
    %215 = arith.addf %213, %214 : vector<8x128xf32>
    %216 = arith.truncf %215 : vector<8x128xf32> to vector<8x128xbf16>
    %c0_124 = arith.constant 0 : index
    %c0_125 = arith.constant 0 : index
    %217 = vector.load %arg9[%c0_124, %c0_125] : memref<256x128xbf16, #tpu.memory_space<vmem>>, vector<256x128xbf16>
    %cst_126 = arith.constant dense<0.000000e+00> : vector<8x256xf32>
    %218 = tpu.matmul %216, %217, %cst_126 {dimension_numbers = #tpu.dot_dimension_numbers<[1], [1], [0], [0], [0, 0, 1, 0], [], []>} : vector<8x128xbf16>, vector<256x128xbf16>, vector<8x256xf32> -> vector<8x256xf32>
    %c0_127 = arith.constant 0 : index
    %c0_128 = arith.constant 0 : index
    %219 = vector.load %arg10[%c0_127, %c0_128] : memref<1x256xf32, #tpu.memory_space<vmem>>, vector<1x256xf32>
    %220 = vector.broadcast %219 : vector<1x256xf32> to vector<8x256xf32>
    %221 = arith.addf %218, %220 : vector<8x256xf32>
    %cst_129 = arith.constant 0.000000e+00 : f32
    %222 = vector.broadcast %cst_129 : f32 to vector<8x256xf32>
    %223 = arith.maximumf %221, %222 : vector<8x256xf32>
    %224 = arith.truncf %223 : vector<8x256xf32> to vector<8x256xbf16>
    %c0_130 = arith.constant 0 : index
    %c0_131 = arith.constant 0 : index
    %225 = vector.load %arg11[%c0_130, %c0_131] : memref<128x256xbf16, #tpu.memory_space<vmem>>, vector<128x256xbf16>
    %cst_132 = arith.constant dense<0.000000e+00> : vector<8x128xf32>
    %226 = tpu.matmul %224, %225, %cst_132 {dimension_numbers = #tpu.dot_dimension_numbers<[1], [1], [0], [0], [0, 0, 1, 0], [], []>} : vector<8x256xbf16>, vector<128x256xbf16>, vector<8x128xf32> -> vector<8x128xf32>
    %c0_133 = arith.constant 0 : index
    %c0_134 = arith.constant 0 : index
    %227 = vector.load %arg12[%c0_133, %c0_134] : memref<1x128xf32, #tpu.memory_space<vmem>>, vector<1x128xf32>
    %228 = vector.broadcast %227 : vector<1x128xf32> to vector<8x128xf32>
    %229 = arith.addf %226, %228 : vector<8x128xf32>
    %230 = arith.addf %215, %229 : vector<8x128xf32>
    %c0_135 = arith.constant 0 : index
    %c0_136 = arith.constant 0 : index
    %231 = vector.load %arg13[%c0_135, %c0_136] : memref<1x128xf32, #tpu.memory_space<vmem>>, vector<1x128xf32>
    %c0_137 = arith.constant 0 : index
    %c0_138 = arith.constant 0 : index
    %232 = vector.load %arg14[%c0_137, %c0_138] : memref<1x128xf32, #tpu.memory_space<vmem>>, vector<1x128xf32>
    %cst_139 = arith.constant dense<0.000000e+00> : vector<8xf32>
    %233 = vector.multi_reduction <add>, %230, %cst_139 [1] : vector<8x128xf32> to vector<8xf32>
    %234 = vector.shape_cast %233 : vector<8xf32> to vector<8x1xf32>
    %cst_140 = arith.constant 1.280000e+02 : f32
    %235 = vector.broadcast %cst_140 : f32 to vector<8x1xf32>
    %236 = arith.divf %234, %235 : vector<8x1xf32>
    %237 = vector.broadcast %236 : vector<8x1xf32> to vector<8x128xf32>
    %238 = arith.subf %230, %237 : vector<8x128xf32>
    %239 = arith.mulf %238, %238 : vector<8x128xf32>
    %cst_141 = arith.constant dense<0.000000e+00> : vector<8xf32>
    %240 = vector.multi_reduction <add>, %239, %cst_141 [1] : vector<8x128xf32> to vector<8xf32>
    %241 = vector.shape_cast %240 : vector<8xf32> to vector<8x1xf32>
    %cst_142 = arith.constant 1.280000e+02 : f32
    %242 = vector.broadcast %cst_142 : f32 to vector<8x1xf32>
    %243 = arith.divf %241, %242 : vector<8x1xf32>
    %244 = vector.broadcast %236 : vector<8x1xf32> to vector<8x128xf32>
    %245 = arith.subf %230, %244 : vector<8x128xf32>
    %cst_143 = arith.constant 9.99999974E-6 : f32
    %246 = vector.broadcast %cst_143 : f32 to vector<8x1xf32>
    %247 = arith.addf %243, %246 : vector<8x1xf32>
    %248 = math.rsqrt %247 : vector<8x1xf32>
    %249 = vector.broadcast %248 : vector<8x1xf32> to vector<8x128xf32>
    %250 = arith.mulf %245, %249 : vector<8x128xf32>
    %251 = vector.broadcast %231 : vector<1x128xf32> to vector<8x128xf32>
    %252 = arith.mulf %250, %251 : vector<8x128xf32>
    %253 = vector.broadcast %232 : vector<1x128xf32> to vector<8x128xf32>
    %254 = arith.addf %252, %253 : vector<8x128xf32>
    %255 = arith.truncf %254 : vector<8x128xf32> to vector<8x128xbf16>
    %c0_144 = arith.constant 0 : index
    %c0_145 = arith.constant 0 : index
    %c0_146 = arith.constant 0 : index
    %256 = vector.load %arg15[%c0_144, %c0_145, %c0_146] : memref<1x8x128xbf16, #tpu.memory_space<vmem>>, vector<1x8x128xbf16>
    %257 = vector.shape_cast %256 : vector<1x8x128xbf16> to vector<8x128xbf16>
    %258 = vector.shape_cast %255 : vector<8x128xbf16> to vector<1x8x128xbf16>
    tpu.vector_store %arg15[%c0_144, %c0_145, %c0_146], %258 {strides = array<i32>} : memref<1x8x128xbf16, #tpu.memory_space<vmem>>, vector<1x8x128xbf16>,
    return
  }
  func.func @transform_0(%arg0: i32) -> (i32, i32, i32) {
    %c0_i32 = arith.constant 0 : i32
    %c0_i32_0 = arith.constant 0 : i32
    %c0_i32_1 = arith.constant 0 : i32
    return %arg0, %c0_i32, %c0_i32_0 : i32, i32, i32
  }
  func.func @transform_1(%arg0: i32) -> (i32, i32, i32) {
    %c0_i32 = arith.constant 0 : i32
    %c0_i32_0 = arith.constant 0 : i32
    %c0_i32_1 = arith.constant 0 : i32
    return %arg0, %c0_i32, %c0_i32_0 : i32, i32, i32
  }
  func.func @transform_2(%arg0: i32) -> (i32, i32, i32) {
    %c0_i32 = arith.constant 0 : i32
    %c0_i32_0 = arith.constant 0 : i32
    %c0_i32_1 = arith.constant 0 : i32
    %c0_i32_2 = arith.constant 0 : i32
    return %c0_i32, %c0_i32_0, %c0_i32_1 : i32, i32, i32
  }
  func.func @transform_3(%arg0: i32) -> (i32, i32, i32) {
    %c0_i32 = arith.constant 0 : i32
    %c0_i32_0 = arith.constant 0 : i32
    %c0_i32_1 = arith.constant 0 : i32
    %c0_i32_2 = arith.constant 0 : i32
    return %c0_i32, %c0_i32_0, %c0_i32_1 : i32, i32, i32
  }
  func.func @transform_4(%arg0: i32) -> (i32, i32, i32) {
    %c0_i32 = arith.constant 0 : i32
    %c0_i32_0 = arith.constant 0 : i32
    %c0_i32_1 = arith.constant 0 : i32
    %c0_i32_2 = arith.constant 0 : i32
    return %c0_i32, %c0_i32_0, %c0_i32_1 : i32, i32, i32
  }
  func.func @transform_5(%arg0: i32) -> (i32, i32) {
    %c0_i32 = arith.constant 0 : i32
    %c0_i32_0 = arith.constant 0 : i32
    %c0_i32_1 = arith.constant 0 : i32
    return %c0_i32, %c0_i32_0 : i32, i32
  }
  func.func @transform_6(%arg0: i32) -> (i32, i32) {
    %c0_i32 = arith.constant 0 : i32
    %c0_i32_0 = arith.constant 0 : i32
    %c0_i32_1 = arith.constant 0 : i32
    return %c0_i32, %c0_i32_0 : i32, i32
  }
  func.func @transform_7(%arg0: i32) -> (i32, i32) {
    %c0_i32 = arith.constant 0 : i32
    %c0_i32_0 = arith.constant 0 : i32
    %c0_i32_1 = arith.constant 0 : i32
    return %c0_i32, %c0_i32_0 : i32, i32
  }
  func.func @transform_8(%arg0: i32) -> (i32, i32) {
    %c0_i32 = arith.constant 0 : i32
    %c0_i32_0 = arith.constant 0 : i32
    %c0_i32_1 = arith.constant 0 : i32
    return %c0_i32, %c0_i32_0 : i32, i32
  }
  func.func @transform_9(%arg0: i32) -> (i32, i32) {
    %c0_i32 = arith.constant 0 : i32
    %c0_i32_0 = arith.constant 0 : i32
    %c0_i32_1 = arith.constant 0 : i32
    return %c0_i32, %c0_i32_0 : i32, i32
  }
  func.func @transform_10(%arg0: i32) -> (i32, i32) {
    %c0_i32 = arith.constant 0 : i32
    %c0_i32_0 = arith.constant 0 : i32
    %c0_i32_1 = arith.constant 0 : i32
    return %c0_i32, %c0_i32_0 : i32, i32
  }
  func.func @transform_11(%arg0: i32) -> (i32, i32) {
    %c0_i32 = arith.constant 0 : i32
    %c0_i32_0 = arith.constant 0 : i32
    %c0_i32_1 = arith.constant 0 : i32
    return %c0_i32, %c0_i32_0 : i32, i32
  }
  func.func @transform_12(%arg0: i32) -> (i32, i32) {
    %c0_i32 = arith.constant 0 : i32
    %c0_i32_0 = arith.constant 0 : i32
    %c0_i32_1 = arith.constant 0 : i32
    return %c0_i32, %c0_i32_0 : i32, i32
  }
  func.func @transform_13(%arg0: i32) -> (i32, i32) {
    %c0_i32 = arith.constant 0 : i32
    %c0_i32_0 = arith.constant 0 : i32
    %c0_i32_1 = arith.constant 0 : i32
    return %c0_i32, %c0_i32_0 : i32, i32
  }
  func.func @transform_14(%arg0: i32) -> (i32, i32, i32) {
    %c0_i32 = arith.constant 0 : i32
    %c0_i32_0 = arith.constant 0 : i32
    %c0_i32_1 = arith.constant 0 : i32
    return %arg0, %c0_i32, %c0_i32_0 : i32, i32, i32
  }
}

</mosaic_0001>

<bundles_post_ra>
// kernel: tpu_custom_call.1
= control target key start
LH: loop header
LB: loop body
LE: loop exit
PB: predicated region body
PF: predicated region fallthrough
CT: control target
= control target key end

     0   :  { %6 = vsyncpa [#allocation3], 0  ;;  %s125_s0 = inlined_call_operand.hbm [shape: f32[8,128], index: 0, kind: input, shape index: {}]   ;;  %s126_s1 = inlined_call_operand.hbm [shape: f32[8,128], index: 1, kind: output, shape index: {}]  }
   0x1   :  { %7 = vsyncpa [#allocation4], 0  ;;  %s89_s6 = smov [#allocation2]   ;;  %s41_s10 = scalar_lea.hbm %s125_s0, 128 }
   0x2   :  { %s14_s7 = sshll.u32 %s89_s6, 4  ;;  %p42_p0 = scmp.ne.s32.totalorder %s125_s0, %s41_s10  ;;  %s15_s7 = int_to_ptr.vmem [resolvable:$true] %s14_s7 }
   0x3   :  { %p45_p1 = scmp.lt.u32.totalorder %s41_s10, %s125_s0 }
   0x5   :  { %p47_p2 = pnand %p45_p1, %p42_p0 }
   0x7   :  { %50 = shalt.err (!%p47_p2)
}
   0x8   :  { %s51_s15 = scalar_lea.vmem %s15_s7, 128  ;;  %p56_p4 = scmp.lt.s32.totalorder %s15_s7, %s15_s7 }
   0x9   :  { %p52_p3 = scmp.ne.s32.totalorder %s15_s7, %s51_s15  ;;  %p57_p5 = scmp.lt.s32.totalorder %s51_s15, %s51_s15 }
   0xb   :  { %p58_p6 = por %p57_p5, %p56_p4 }
   0xd   :  { %p59_p7 = pnand %p58_p6, %p52_p3 }
   0xf   :  { %62 = shalt.err (!%p59_p7)
}
  0x10   :  { %17 = dma.hbm_to_vmem [thread:$0]  %s125_s0, 128, %s15_s7, [#allocation3]  }
  0x11   :  { %85 = dma.done.wait [#allocation3], 128  }
  0x12   :  { %86 = vsyncadd [#allocation3], 4294967168  ;;  %s90_s18 = smov [#allocation5]   ;;  %v21_v0 = vld [vmem:[#allocation2] sm:$0xff] }
  0x13   :  { %s30_s19 = sshll.u32 %s90_s18, 4  ;;  %v22_v1 = vadd.f32 1.0, %v21_v0  ;;  %s31_s19 = int_to_ptr.vmem [resolvable:$true] %s30_s19 }
  0x14   :  { %s63_s20 = scalar_lea.vmem %s31_s19, 128  ;;  %p68_p9 = scmp.lt.s32.totalorder %s31_s19, %s31_s19 }
  0x15   :  { %23 = vst [vmem:[#allocation5] sm:$0xff] %v22_v1  ;;  %p64_p8 = scmp.ne.s32.totalorder %s31_s19, %s63_s20  ;;  %p69_p10 = scmp.lt.s32.totalorder %s63_s20, %s63_s20 }
  0x17   :  { %p70_p11 = por %p69_p10, %p68_p9 }
  0x19   :  { %p71_p12 = pnand %p70_p11, %p64_p8 }
  0x1b   :  { %74 = shalt.err (!%p71_p12)
}
  0x1c   :  { %s75_s23 = scalar_lea.hbm %s126_s1, 128 }
  0x1d   :  { %p76_p13 = scmp.ne.s32.totalorder %s126_s1, %s75_s23  ;;  %p79_p0 = scmp.lt.u32.totalorder %s75_s23, %s126_s1 }
  0x1f   :  { %p81_p1 = pnand %p79_p0, %p76_p13 }
  0x21   :  { %84 = shalt.err (!%p81_p1)
}
  0x22   :  { %33 = dma.vmem_to_hbm [thread:$0]  %s31_s19, 128, %s126_s1, [#allocation4]  }
  0x23   :  { %87 = dma.done.wait [#allocation4], 128  }
  0x24   :  { %88 = vsyncadd [#allocation4], 4294967168 }
  0x25   :  { %37 = vsyncpa [#allocation3], 1 }
  0x26   :  { %38 = vsyncpa [#allocation4], 1 }

// kernel: tpu_custom_call.1
= control target key start
LH: loop header
LB: loop body
LE: loop exit
PB: predicated region body
PF: predicated region fallthrough
CT: control target
= control target key end

     0   :  { %s4432_s0 = inlined_call_operand.hbm [shape: bf16[2,8,128], index: 0, kind: input, shape index: {}]   ;;  %s4433_s1 = inlined_call_operand.vmem [shape: f32[2,1,8], index: 1, kind: input, shape index: {}]   ;;  %s4434_s2 = inlined_call_operand.vmem [shape: bf16[12,32,128], index: 2, kind: input, shape index: {}]   ;;  %s4435_s3 = inlined_call_operand.hbm [shape: f32[12,1,32], index: 3, kind: input, shape index: {}]   ;;  %s4436_s4 = inlined_call_operand.vmem [shape: bf16[4,128,32], index: 4, kind: input, shape index: {}]   ;;  %s4437_s5 = inlined_call_operand.vmem [shape: f32[1,128], index: 5, kind: input, shape index: {}]   ;;  %s4438_s6 = inlined_call_operand.vmem [shape: f32[1,128], index: 6, kind: input, shape index: {}]   ;;  %s4439_s7 = inlined_call_operand.vmem [shape: f32[1,128], index: 7, kind: input, shape index: {}]   ;;  %s4440_s8 = inlined_call_operand.vmem [shape: bf16[256,128], index: 8, kind: input, shape index: {}]   ;;  %s4441_s9 = inlined_call_operand.vmem [shape: f32[1,256], index: 9, kind: input, shape index: {}]   ;;  %s4442_s10 = inlined_call_operand.hbm [shape: bf16[128,256], index: 10, kind: input, shape index: {}]   ;;  %s4443_s11 = inlined_call_operand.vmem [shape: f32[1,128], index: 11, kind: input, shape index: {}]   ;;  %s4444_s12 = inlined_call_operand.vmem [shape: f32[1,128], index: 12, kind: input, shape index: {}]   ;;  %s4445_s13 = inlined_call_operand.vmem [shape: f32[1,128], index: 13, kind: input, shape index: {}]   ;;  %s4446_s14 = inlined_call_operand.hbm [shape: bf16[2,8,128], index: 14, kind: output, shape index: {}]  }
   0x1   :  { %4453 = sst [smem:[#allocation14_spill]] %s4432_s0 }
   0x2   :  { %4454 = sst [smem:[#allocation15_spill]] %s4433_s1 }
   0x3   :  { %4455 = sst [smem:[#allocation16_spill]] %s4443_s11 }
   0x4   :  { %4456 = sst [smem:[#allocation17_spill]] %s4444_s12 }
   0x5   :  { %4457 = sst [smem:[#allocation18_spill]] %s4445_s13 }
   0x6   :  { %4458 = sst [smem:[#allocation19_spill]] %s4446_s14 }
   0x7   :  { %19 = vsyncpa [#allocation3], 0 }
   0x8   :  { %21 = vsyncpa [#allocation3 + $0x1], 0 }
   0x9   :  { %22 = vsyncpa [#allocation6], 0 }
   0xa   :  { %23 = vsyncpa [#allocation4], 0 }
   0xb   :  { %25 = vsyncpa [#allocation4 + $0x1], 0  ;;  %s3752_s29 = smov 0   ;;  %s3754_s30 = smov 0  }
   0xc   :  { %s3756_s15 = smov 0   ;;  %s3758_s16 = smov 0  }
   0xd LB: > { %4459 = sst [smem:[#allocation12_spill]] %s3653_s29  ;;  %s3773_s17 = sadd.s32 4294967295, %s3665_s16   ;;  %s3665_s16 = sphi %s3758_s16, %s4486_s16   ;;  %s3661_s15 = sphi %s3756_s15, %s4485_s15   ;;  %s3657_s30 = sphi %s3754_s30, %s4484_s30   ;;  %s3653_s29 = sphi %s3752_s29, %s4483_s29  }
   0xe   : > { %s2762_s18 = sadd.s32 4294967294, %s3665_s16   ;;  %p51_p0 = scmp.ne.s32.totalorder %s3657_s30, %s3653_s29 }
   0xf   : > { %p4450_p1 = scmp.eq.s32.totalorder %s3773_s17, 0  ;;  %p359_p3 = scmp.eq.s32.totalorder %s2762_s18, 1 }
  0x10   : > { %p2763_p5 = scmp.ge.s32.totalorder %s3665_s16, 1  ;;  %p366_p7 = scmp.lt.s32.totalorder %s3665_s16, 3 }
  0x11   : > { %p3782_p4 = por %p4450_p1, %p51_p0  ;;  %p3787_p6 = por %p359_p3, %p51_p0 }
  0x12   : > { %p3792_p8 = pnand %p2763_p5, %p366_p7  ;;  %s3667_s22 = smov [#allocation5]  }
  0x13   : > { %s4460_s19 = scalar_select %p3782_p4, 1, 0 }
  0x14   : > { %s4461_s20 = scalar_select %p3787_p6, 1, 0 }
  0x15   : > { %s381_s23 = sshll.u32 %s3667_s22, 4  ;;  %p3331_p9 = pneg %p3792_p8  ;;  %s3796_s23 = int_to_ptr.vmem [resolvable:$true] %s381_s23 }
  0x16   : > { %4462 = sst [smem:[#allocation13_spill]] %s4461_s20  ;;  %s3668_s25 = smov [#allocation7]  }
  0x17   : > { %p3803_p11 = pnand %p3331_p9, %p4450_p1  ;;  %s412_s26 = sshll.u32 %s3668_s25, 4  ;;  %s3807_s26 = int_to_ptr.vmem [resolvable:$true] %s412_s26 }
  0x18   : > { %s3509_s18 = scalar_lea.hbm %s4435_s3, 192 }
  0x19   : > { %p3510_p12 = scmp.ne.s32.totalorder %s4435_s3, %s3509_s18  ;;  %p3511_p13 = pneg %p3803_p11 }
  0x1a   : > { %p3516_p5 = scmp.lt.u32.totalorder %s3509_s18, %s4435_s3 }
  0x1b   : > { %p3512_p0 = pnand %p3511_p13, %p3510_p12 }
  0x1d   : > { %p3513_p3 = pneg %p3512_p0 }
  0x1f   : > { %p3518_p7 = pnand %p3516_p5, %p3513_p3 }
  0x21   : > { %3521 = shalt.err (!%p3518_p7)
}
  0x22   : > { %s3522_s25 = scalar_lea.vmem %s3796_s23, 192  ;;  %p3530_p2 = scmp.lt.s32.totalorder %s3796_s23, %s3796_s23 }
  0x23   : > { %p3523_p9 = scmp.ne.s32.totalorder %s3796_s23, %s3522_s25  ;;  %p3531_p12 = scmp.lt.s32.totalorder %s3522_s25, %s3522_s25 }
  0x25   : > { %p3525_p10 = pnand %p3523_p9, %p3511_p13  ;;  %p3532_p0 = por %p3531_p12, %p3530_p2 }
  0x27   : > { %p3526_p1 = pneg %p3525_p10 }
  0x29   : > { %p3533_p6 = pnand %p3532_p0, %p3526_p1 }
  0x2b   : > { %3536 = shalt.err (!%p3533_p6)
}
  0x2c   : > { %s3669_s14 = smov 16   ;;  %s3670_s29 = smov 1  }
  0x2d   : > { %3334 = dma.hbm_to_vmem [thread:$0]  (!%p3803_p11), %s4435_s3, 192, %s3796_s23, [#allocation6], %s3669_s14, %s3669_s14, %s3670_s29  }
  0x2e   : > { %s3537_s22 = scalar_lea.hbm %s4442_s10, 2048 }
  0x2f   : > { %p3538_p2 = scmp.ne.s32.totalorder %s4442_s10, %s3537_s22  ;;  %p3544_p10 = scmp.lt.u32.totalorder %s3537_s22, %s4442_s10 }
  0x31   : > { %p3540_p1 = pnand %p3538_p2, %p3511_p13 }
  0x33   : > { %p3541_p6 = pneg %p3540_p1 }
  0x35   : > { %p3546_p3 = pnand %p3544_p10, %p3541_p6 }
  0x37   : > { %3549 = shalt.err (!%p3546_p3)
}
  0x38   : > { %s3550_s23 = scalar_lea.vmem %s3807_s26, 2048  ;;  %p3558_p12 = scmp.lt.s32.totalorder %s3807_s26, %s3807_s26 }
  0x39   : > { %p3551_p5 = scmp.ne.s32.totalorder %s3807_s26, %s3550_s23  ;;  %p3559_p0 = scmp.lt.s32.totalorder %s3550_s23, %s3550_s23 }
  0x3b   : > { %p3553_p7 = pnand %p3551_p5, %p3511_p13  ;;  %p3560_p2 = por %p3559_p0, %p3558_p12 }
  0x3d   : > { %p3554_p9 = pneg %p3553_p7 }
  0x3f   : > { %p3561_p1 = pnand %p3560_p2, %p3554_p9 }
  0x41   : > { %3564 = shalt.err (!%p3561_p1)
}
  0x42   : > { %s3671_s11 = smov 128   ;;  %s3672_s12 = smov 8  }
  0x43   : > { %3337 = dma.hbm_to_vmem [thread:$0]  (!%p3803_p11), %s4442_s10, 2048, %s3807_s26, [#allocation6], %s3671_s11, %s3671_s11, %s3672_s12  }
  0x44   : > { %s3862_s29 = sadd.s32 1, %s3665_s16   ;;  %s38_s27 = sadd.s32 1, %s3661_s15 }
  0x45   : > { %s35_s20 = ssub.s32 %s3665_s16, %s3862_s29  ;;  %p45_p6 = scmp.ne.s32.totalorder %s3661_s15, %s3657_s30 }
  0x46   : > { %p36_p13 = scmp.eq.s32.totalorder %s35_s20, 0  ;;  %p46_p10 = scmp.eq.s32.totalorder %s3665_s16, 0 }
  0x47   : > { %p4465_p5 = scmp.eq.s32.totalorder %s3773_s17, 1  ;;  %p3348_p9 = scmp.lt.s32.totalorder %s3665_s16, 2 }
  0x48   : > { %s3871_s28 = scalar_select %p36_p13, %s3661_s15, %s38_s27  }
  0x49   : > { %p47_p3 = por %p46_p10, %p45_p6  ;;  %p3875_p7 = por %p4465_p5, %p45_p6 }
  0x4a   : > { %s435_s24 = sand.u32 1, %s3661_s15   ;;  %s2768_s26 = sshll.u32 %s3665_s16, 6 }
  0x4b   : > { %s4466_s18 = scalar_select %p3875_p7, 1, 0 }
  0x4c   : > { %s2767_s22 = sshll.u32 %s435_s24, 2  ;;  %s4467_s0 = sld [smem:[#allocation14_spill]] }
  0x4d   : > { %s439_s12 = scalar_lea.vmem [#allocation2], %s2767_s22  ;;  %p3889_p11 = pnand %p3348_p9, %p47_p3 }
  0x4e   : > { %s446_s13 = sshll.u32 %s439_s12, 4  ;;  %s436_s20 = scalar_lea.sflag [#allocation3], %s435_s24  ;;  %s3887_s13 = int_to_ptr.vmem [resolvable:$true] %s446_s13 }
  0x4f   : > { %p3567_p0 = pneg %p3889_p11 }
  0x52   : > { %s3885_s11 = scalar_lea.hbm %s4467_s0, %s2768_s26  ;;  %s3570_s25 = scalar_lea.hbm %s4467_s0, 128 }
  0x53   : > { %s3565_s27 = scalar_lea.hbm %s3885_s11, 64  ;;  %p3571_p13 = scmp.lt.u32.totalorder %s3885_s11, %s4467_s0 }
  0x54   : > { %p3566_p12 = scmp.ne.s32.totalorder %s3885_s11, %s3565_s27  ;;  %p3572_p6 = scmp.lt.u32.totalorder %s3570_s25, %s3565_s27 }
  0x55   : > { %p3574_p3 = scmp.lt.u32.totalorder %s3565_s27, %s3885_s11 }
  0x56   : > { %p3568_p2 = pnand %p3567_p0, %p3566_p12  ;;  %p3573_p10 = por %p3572_p6, %p3571_p13 }
  0x58   : > { %p3569_p1 = pneg %p3568_p2  ;;  %p3575_p5 = por %p3574_p3, %p3573_p10 }
  0x5a   : > { %p3576_p9 = pnand %p3575_p5, %p3569_p1 }
  0x5c   : > { %3579 = shalt.err (!%p3576_p9)
}
  0x5d   : > { %s3580_s24 = scalar_lea.vmem %s3887_s13, 64  ;;  %s3673_s26 = smov [#allocation2]  }
  0x5e   : > { %p3581_p12 = scmp.ne.s32.totalorder %s3887_s13, %s3580_s24  ;;  %s3585_s22 = sshll.u32 %s3673_s26, 4  ;;  %s3586_s22 = int_to_ptr.vmem [resolvable:$false] %s3585_s22 }
  0x5f   : > { %s3587_s23 = scalar_lea.vmem %s3586_s22, 128  ;;  %p3588_p4 = scmp.lt.s32.totalorder %s3887_s13, %s3586_s22 }
  0x60   : > { %p3583_p2 = pnand %p3581_p12, %p3567_p0  ;;  %p3589_p13 = scmp.lt.s32.totalorder %s3587_s23, %s3580_s24 }
  0x62   : > { %p3584_p7 = pneg %p3583_p2  ;;  %p3590_p6 = por %p3589_p13, %p3588_p4 }
  0x64   : > { %p3591_p10 = pnand %p3590_p6, %p3584_p7 }
  0x66   : > { %3594 = shalt.err (!%p3591_p10)
}
  0x67   : > { %3341 = dma.hbm_to_vmem [thread:$0]  (!%p3889_p11), %s3885_s11, 64, %s3887_s13, %s436_s20  }
  0x68   : > { %461 = sbr.rel (%p3792_p8) target bundleno = 4332 (0x10ec), region = 76  ;;  %s3921_s27 = sand.u32 (!%p3792_p8), 1, %s3657_s30  }
  0x69   : > { %s2770_s25 = sshll.u32 (!%p3792_p8), %s3921_s27, 2  ;;  %s464_s12 = scalar_lea.sflag (!%p3792_p8), [#allocation3], %s3921_s27 }
  0x6a   : > { %s3927_s24 = scalar_lea.vmem (!%p3792_p8), [#allocation2], %s2770_s25  ;;  %p4469_p4 = scmp.ne.s32.totalorder (!%p3792_p8), %s4460_s19, 0 }
  0x6f   : > { %3640 = dma.done.wait (%p4469_p4), %s464_s12, 64  }
  0x70   : > { %3642 = vsyncadd (%p4469_p4), %s464_s12, 4294967232  ;;  %p4470_p7 = scmp.eq.s32.totalorder %s3773_s17, 0 }
  0x72   : > { %3644 = dma.done.wait (%p4470_p7), [#allocation6], 2240   ;;  %p4471_p8 = pmov %p4470_p7 }
  0x73   : > { %v3674_v0 = vmov 0.0   ;;  %vm3675_vm0 = vmmov 0   ;;  %v3392_v1 = vld [vmem:[%s4434_s2] sm:$0xff]   ;;  %v3393_v2 = vld [vmem:[%s4434_s2 + $0x8] sm:$0xff]   ;;  %vm724_vm1 = vcmask 261120   ;;  %vm794_vm2 = vcmask 1043456  }
  0x74   : > { %3646 = vsyncadd (%p4471_p8), [#allocation6], 4294965056  ;;  %3095 = vmatprep.subr.bf16.mxu1 %v3674_v0  ;;  %3099 = vmatprep.mubr.msk.bf16.mxu1 %vm3675_vm0, %v3674_v0  ;;  %v3952_v3 = vld [vmem:[%s3927_s24] sm:$0xf]  ;;  %v3395_v5 = vld [vmem:[%s4434_s2 + $0x48] sm:$0xff]   ;;  %p523_p11 = scmp.lt.s32.totalorder %s3773_s17, 1 }
  0x75   : > { %3131 = vmatprep.subr.bf16.mxu0 %v3674_v0  ;;  %3135 = vmatprep.mubr.msk.bf16.mxu0 %vm3675_vm0, %v3674_v0  ;;  %v3394_v4 = vld [vmem:[%s4434_s2 + $0x40] sm:$0xff]   ;;  %v3397_v7 = vld [vmem:[%s4434_s2 + $0x88] sm:$0xff]   ;;  %v2788_v23 = vld [vmem:[#allocation5 + $0x8] ss:$0 sm:$0xff]  ;;  %s4472_s1 = sld [smem:[#allocation15_spill]]  ;;  %vm779_vm3 = vcmask 64512  }
  0x76   : > { %3096 = vmatpush3.bf16.xpose.msra.mxu1 %v3392_v1  ;;  %v3396_v6 = vld [vmem:[%s4434_s2 + $0x80] sm:$0xff]   ;;  %v2781_v12 = vld [vmem:[#allocation5 + $0x4] ss:$0 sm:$0xff]  ;;  %v2774_v19 = vld [vmem:[#allocation5] ss:$0 sm:$0xff]  ;;  %s524_s11 = scalar_select %p523_p11, %s3773_s17, 1 }
  0x77   : > { %3097 = vmatprep.subr.bf16.mxu1 %v3674_v0  ;;  %v3399_v39 = vld [vmem:[%s4434_s2 + $0x10] sm:$0xff]   ;;  %v3401_v40 = vld [vmem:[%s4434_s2 + $0x18] sm:$0xff]   ;;  %v2805_v59 = vld [vmem:[#allocation5 + $0x5] ss:$0 sm:$0xff]  ;;  %s4473_s14 = sld [smem:[#allocation16_spill]]  ;;  %s4474_s22 = sld [smem:[#allocation17_spill]] }
  0x78   : > { %3132 = vmatpush3.bf16.xpose.msra.mxu0 %v3399_v39  ;;  %v3398_v45 = vld [vmem:[%s4434_s2 + $0x50] sm:$0xff]   ;;  %v3400_v48 = vld [vmem:[%s4434_s2 + $0x58] sm:$0xff]   ;;  %v2798_v1 = vld [vmem:[#allocation5 + $0x1] ss:$0 sm:$0xff]  ;;  %s4475_s19 = sld [smem:[#allocation18_spill]]  ;;  %s522_s21 = scalar_lea.vmem [#allocation8], %s2770_s25 }
  0x79   : > { %3133 = vmatprep.subr.bf16.mxu0 %v3674_v0  ;;  %v3402_v53 = vld [vmem:[%s4434_s2 + $0x90] sm:$0xff]   ;;  %v3403_v54 = vld [vmem:[%s4434_s2 + $0x98] sm:$0xff]   ;;  %s4476_s0 = sld [smem:[#allocation19_spill]]  ;;  %p4477_p1 = scmp.ne.s32.totalorder %s4466_s18, 0 }
  0x7a   : > { %v3407_v39 = vld [vmem:[%s4436_s4 + $0x18] sm:$0xff]  }
  0x7b   : > { %s525_s20 = scalar_lea.vmem %s4472_s1, %s524_s11  ;;  %s2664_s11 = sshll.u32 %s522_s21, 4  ;;  %s4390_s11 = int_to_ptr.vmem [resolvable:$true] %s2664_s11 }
  0x7c   : > { %v3991_v32 = vld [vmem:[%s525_s20] ss:$0 sm:$0xff]  ;;  %s2651_s20 = scalar_lea.sflag [#allocation4], %s3921_s27  ;;  %s3595_s26 = scalar_lea.vmem %s4390_s11, 64 }
  0x7d   : > { %p3596_p0 = scmp.ne.s32.totalorder %s4390_s11, %s3595_s26 }
  0x7e   : > { %3098 = vmatpush3.bf16.xpose.msra.mxu1 %v3393_v2 }
  0x7f   : > { %3103 = vmatprep.subr.bf16.mxu1 %v3674_v0  ;;  %p3597_p3 = pnand %p3596_p0, %p4477_p1 }
  0x80   : > { %3134 = vmatpush3.bf16.xpose.msra.mxu0 %v3401_v40 }
  0x81   : > { %3147 = vmatprep.subr.bf16.mxu0 %v3674_v0  ;;  %p3598_p5 = pneg %p3597_p3 }
  0x85   : > { %3100 = vmatmul.mubr.bf16.vlgmr.msra.gmra.mrb[0].mxu1 %v3952_v3 }
  0x86   : > { %3104 = vmatpush3.bf16.xpose.msra.mxu1 %v3394_v4  ;;  %3107 = vmatprep.mubr.msk.bf16.mxu1 %vm3675_vm0, %v3674_v0 }
  0x87   : > { %3105 = vmatprep.subr.bf16.mxu1 %v3674_v0  ;;  %3136 = vmatmul.mubr.bf16.vlgmr.msra.gmra.mrb[0].mxu0 %v3952_v3 }
  0x88   : > { %3151 = vmatprep.mubr.msk.bf16.mxu0 %vm3675_vm0, %v3674_v0  ;;  %3148 = vmatpush3.bf16.xpose.msra.mxu0 %v3402_v53 }
  0x89   : > { %3149 = vmatprep.subr.bf16.mxu0 %v3674_v0 }
  0x8e   : > { %3106 = vmatpush3.bf16.xpose.msra.mxu1 %v3395_v5 }
  0x8f   : > { %3111 = vmatprep.subr.bf16.mxu1 %v3674_v0 }
  0x90   : > { %3150 = vmatpush3.bf16.xpose.msra.mxu0 %v3403_v54 }
  0x91   : > { %3167 = vmatprep.subr.bf16.mxu0 %v3674_v0 }
  0x95   : > { %3108 = vmatmul.mubr.bf16.vlgmr.msra.gmra.mrb[4].mxu1 %v3952_v3 }
  0x96   : > { %3115 = vmatprep.mubr.msk.bf16.mxu1 %vm3675_vm0, %v3674_v0  ;;  %3112 = vmatpush3.bf16.xpose.msra.mxu1 %v3396_v6 }
  0x97   : > { %3113 = vmatprep.subr.bf16.mxu1 %v3674_v0  ;;  %3152 = vmatmul.mubr.bf16.vlgmr.msra.gmra.mrb[4].mxu0 %v3952_v3 }
  0x98   : > { %3183 = vmatprep.mubr.msk.bf16.mxu0 %vm3675_vm0, %v3674_v0 }
  0x9e   : > { %3114 = vmatpush3.bf16.xpose.msra.mxu1 %v3397_v7 }
  0x9f   : > { %3119 = vmatprep.subr.bf16.mxu1 %v3674_v0 }
  0xa5   : > { %3116 = vmatmul.mubr.bf16.vlgmr.msra.gmra.mrb[8].mxu1 %v3952_v3 }
  0xa6   : > { %3121 = vmatprep.mubr.msk.bf16.mxu1 %vm3675_vm0, %v3674_v0 }
 0x158   : > { %v586_v8 = vpop.f32.mrb[0].mxu1 }
 0x159   : > { %v3101_v9 = vpop.f32.mrb[1].mxu1  ;;  %v587_v21 = vadd.f32 %v2774_v19, %v586_v8 }
 0x15a   : > { %v589_v10 = vpop.f32.mrb[2].mxu1  ;;  %v916_v49 = vpop.f32.mrb[0].mxu0 }
 0x15b   : > { %v3102_v11 = vpop.f32.mrb[3].mxu1  ;;  %v722_v22 = vpack.c.bf16 %v587_v21, %v587_v21  ;;  %v3137_v50 = vpop.f32.mrb[1].mxu0  ;;  %v917_v6 = vadd.f32 %v2798_v1, %v916_v49  ;;  %v3419_v1 = vld [vmem:[%s4434_s2 + $0x60] sm:$0xff]  }
 0x15c   : > { %v919_v51 = vpop.f32.mrb[2].mxu0  ;;  %v3416_v50 = vld [vmem:[%s4436_s4 + $0x60] sm:$0xff]  }
 0x15d   : > { %v3138_v52 = vpop.f32.mrb[3].mxu0  ;;  %v1052_v7 = vpack.c.bf16 %v917_v6, %v917_v6  ;;  %v3410_v51 = vld [vmem:[%s4436_s4 + $0x30] sm:$0xff]   ;;  %v1235_v53 = vsel %vm724_vm1, %v3416_v50, 0 }
 0x15e   : > { %v1348_v54 = vsel %vm724_vm1, %v3410_v51, 0 }
 0x168   : > { %v651_v13 = vpop.f32.mrb[4].mxu1 }
 0x169   : > { %v652_v14 = vadd.f32 %v2781_v12, %v651_v13  ;;  %v3109_v15 = vpop.f32.mrb[5].mxu1 }
 0x16a   : > { %v654_v16 = vpop.f32.mrb[6].mxu1  ;;  %v2812_v15 = vld [vmem:[#allocation5 + $0x9] ss:$0 sm:$0xff] }
 0x16b   : > { %v723_v17 = vpack.c.bf16 %v652_v14, %v652_v14  ;;  %v3110_v18 = vpop.f32.mrb[7].mxu1  ;;  %v1046_v16 = vpop.f32.mrb[4].mxu0 }
 0x16c   : > { %v3153_v18 = vpop.f32.mrb[5].mxu0 }
 0x16d   : > { %v729_v20 = vsel %vm724_vm1, %v723_v17, 0  ;;  %v1047_v17 = vadd.f32 %v2812_v15, %v1046_v16  ;;  %v1049_v19 = vpop.f32.mrb[6].mxu0  ;;  %v3423_v15 = vld [vmem:[%s4434_s2 + $0x28] sm:$0xff]  }
 0x16e   : > { %3120 = vmatpush3.bf16.xpose.msra.mxu1 %v729_v20  ;;  %v3154_v21 = vpop.f32.mrb[7].mxu0 }
 0x16f   : > { %3125 = vmatprep.subr.bf16.mxu1 %v3674_v0  ;;  %v1112_v20 = vpack.c.bf16 %v1047_v17, %v1047_v17 }
 0x175   : > { %3122 = vmatmul.mubr.msk.bf16.vlgmr.msra.gmra.mrb[12].mxu1 %vm724_vm1, %v722_v22  ;;  %v1117_v22 = vsel %vm794_vm2, %v1112_v20, 0  ;;  %v2862_v20 = vld [vmem:[#allocation5 + $0x6] ss:$0 sm:$0xff] }
 0x176   : > { %3127 = vmatprep.mubr.msk.bf16.mxu1 %vm3675_vm0, %v3674_v0 }
 0x178   : > { %v716_v24 = vpop.f32.mrb[8].mxu1 }
 0x179   : > { %v717_v25 = vadd.f32 %v2788_v23, %v716_v24  ;;  %v3117_v26 = vpop.f32.mrb[9].mxu1 }
 0x17a   : > { %v719_v27 = vpop.f32.mrb[10].mxu1  ;;  %v3404_v26 = vld [vmem:[%s4436_s4] sm:$0xff]  }
 0x17b   : > { %v790_v28 = vpack.c.bf16 %v717_v25, %v717_v25  ;;  %v3118_v29 = vpop.f32.mrb[11].mxu1 }
 0x17d   : > { %v796_v30 = vsel %vm794_vm2, %v790_v28, 0 }
 0x17e   : > { %3126 = vmatpush3.bf16.msra.mxu1 %v796_v30  ;;  %v1330_v30 = vsel %vm724_vm1, %v3404_v26, 0 }
 0x17f   : > { %3139 = vmatprep.subr.bf16.mxu1 %v3674_v0 }
 0x248   : > { %v765_v31 = vpop.f32.mrb[12].mxu1 }
 0x249   : > { %v771_v33 = vmul.f32 0.17677669, %v765_v31  ;;  %v3123_v34 = vpop.f32.mrb[13].mxu1  ;;  %v3405_v31 = vld [vmem:[%s4436_s4 + $0x8] sm:$0xff]  }
 0x24a   : > { %v768_v35 = vpop.f32.mrb[14].mxu1  ;;  %v3406_v34 = vld [vmem:[%s4436_s4 + $0x10] sm:$0xff]  }
 0x24b   : > { %v3124_v36 = vpop.f32.mrb[15].mxu1  ;;  %v778_v37 = vadd.f32 %v3991_v32, %v771_v33  ;;  %v1333_v33 = vsel %vm724_vm1, %v3405_v31, 0  ;;  %v3412_v35 = vld [vmem:[%s4436_s4 + $0x40] sm:$0xff]  }
 0x24c   : > { %v1336_v36 = vsel %vm724_vm1, %v3406_v34, 0 }
 0x24d   : > { %v780_v38 = vsel %vm779_vm3, %v778_v37, -inf }
 0x24e   : > { %781 = vmax.xlane.f32.xlu0 %v780_v38  ;;  %v3413_v38 = vld [vmem:[%s4436_s4 + $0x48] sm:$0xff]  }
 0x24f   : > { %v1226_v40 = vsel %vm724_vm1, %v3413_v38, 0 }
 0x2db   : > { %v782_v41 = vpop.xlane.xlu0 %781 }
 0x2dc   : > { %v783_v42 = vsub.f32 %v778_v37, %v782_v41  ;;  %v1223_v37 = vsel %vm724_vm1, %v3412_v35, 0  ;;  %v1339_v41 = vsel %vm724_vm1, %v3407_v39, 0 }
 0x2dd   : > { %3168 = vmatpush3.bf16.xpose.msra.mxu0 %v1223_v37 }
 0x2de   : > { %v784_v43 = vmul.f32 1.442695, %v783_v42  ;;  %3169 = vmatprep.subr.bf16.mxu0 %v3674_v0  ;;  %v3414_v42 = vld [vmem:[%s4436_s4 + $0x50] sm:$0xff]  }
 0x2e0   : > { %3488 = vpow2.f32 %v784_v43  ;;  %v3408_v43 = vld [vmem:[%s4436_s4 + $0x20] sm:$0xff]  }
 0x2e5   : > { %3170 = vmatpush3.bf16.xpose.msra.mxu0 %v1226_v40 }
 0x2e6   : > { %3171 = vmatprep.subr.bf16.mxu0 %v3674_v0 }
 0x2ea   : > { %v3489_v44 = vpop.eup %3488 }
 0x2eb   : > { %v786_v46 = vsel %vm779_vm3, %v3489_v44, 0.0  ;;  %v789_v47 = vpack.c.bf16 %v3489_v44, %v3489_v44  ;;  %v1229_v44 = vsel %vm724_vm1, %v3414_v42, 0 }
 0x2ec   : > { %787 = vadd.xlane.f32.xlu1 %v786_v46  ;;  %v3415_v46 = vld [vmem:[%s4436_s4 + $0x58] sm:$0xff]  }
 0x2ed   : > { %3128 = vmatmul.mubr.msk.bf16.vlgmr.msra.gmra.mrb[16].mxu1 %vm779_vm3, %v789_v47  ;;  %3172 = vmatpush3.bf16.xpose.msra.mxu0 %v1229_v44  ;;  %v3409_v47 = vld [vmem:[%s4436_s4 + $0x28] sm:$0xff]  }
 0x2ee   : > { %3140 = vmatpush3.bf16.xpose.msra.mxu1 %v3398_v45  ;;  %3143 = vmatprep.mubr.msk.bf16.mxu1 %vm3675_vm0, %v3674_v0  ;;  %v1342_v45 = vsel %vm724_vm1, %v3408_v43, 0  ;;  %v1345_v49 = vsel %vm724_vm1, %v3409_v47, 0  ;;  %v2869_v43 = vld [vmem:[#allocation5 + $0xa] ss:$0 sm:$0xff] }
 0x2ef   : > { %3141 = vmatprep.subr.bf16.mxu1 %v3674_v0  ;;  %3173 = vmatprep.subr.bf16.mxu0 %v3674_v0 }
 0x2f6   : > { %3142 = vmatpush3.bf16.xpose.msra.mxu1 %v3400_v48  ;;  %v1232_v48 = vsel %vm724_vm1, %v3415_v46, 0 }
 0x2f7   : > { %3155 = vmatprep.subr.bf16.mxu1 %v3674_v0  ;;  %3174 = vmatpush3.bf16.xpose.msra.mxu0 %v1232_v48 }
 0x2f8   : > { %3175 = vmatprep.subr.bf16.mxu0 %v3674_v0 }
 0x2fd   : > { %3144 = vmatmul.mubr.bf16.vlgmr.msra.gmra.mrb[20].mxu1 %v3952_v3 }
 0x2fe   : > { %3157 = vmatprep.mubr.msk.bf16.mxu1 %vm3675_vm0, %v3674_v0 }
 0x2ff   : > { %3176 = vmatpush3.bf16.xpose.msra.mxu0 %v1235_v53 }
 0x300   : > { %3177 = vmatprep.subr.bf16.mxu0 %v3674_v0 }
 0x379   : > { %v788_v52 = vpop.xlane.xlu1 %787 }
 0x3c0   : > { %v4032_v55 = vpop.f32.mrb[16].mxu1 }
 0x3c1   : > { %v3129_v56 = vpop.f32.mrb[17].mxu1 }
 0x3c2   : > { %v835_v57 = vpop.f32.mrb[18].mxu1  ;;  %v3417_v56 = vld [vmem:[%s4436_s4 + $0x68] sm:$0xff]  }
 0x3c3   : > { %v3130_v58 = vpop.f32.mrb[19].mxu1  ;;  %v3411_v57 = vld [vmem:[%s4436_s4 + $0x38] sm:$0xff]  }
 0x3c4   : > { %v1238_v58 = vsel %vm724_vm1, %v3417_v56, 0 }
 0x3c5   : > { %3178 = vmatpush3.bf16.xpose.msra.mxu0 %v1238_v58 }
 0x3c6   : > { %3179 = vmatprep.subr.bf16.mxu0 %v3674_v0 }
 0x3d0   : > { %v981_v60 = vpop.f32.mrb[20].mxu1 }
 0x3d1   : > { %v982_v61 = vadd.f32 %v2805_v59, %v981_v60  ;;  %v3145_v62 = vpop.f32.mrb[21].mxu1  ;;  %v1351_v59 = vsel %vm724_vm1, %v3411_v57, 0 }
 0x3d2   : > { %v984_v63 = vpop.f32.mrb[22].mxu1 }
 0x3d3   : > { %v1053_v2 = vpack.c.bf16 %v982_v61, %v982_v61  ;;  %v3146_v4 = vpop.f32.mrb[23].mxu1  ;;  %v3418_v61 = vld [vmem:[%s4436_s4 + $0x70] sm:$0xff]  }
 0x3d4   : > { %v1241_v63 = vsel %vm724_vm1, %v3418_v61, 0  ;;  %v3420_v4 = vld [vmem:[%s4436_s4 + $0x78] sm:$0xff]  }
 0x3d5   : > { %v1058_v5 = vsel %vm724_vm1, %v1053_v2, 0  ;;  %3180 = vmatpush3.bf16.xpose.msra.mxu0 %v1241_v63  ;;  %v3426_v63 = vld [vmem:[%s4434_s2 + $0x30] sm:$0xff]  }
 0x3d6   : > { %3156 = vmatpush3.bf16.xpose.msra.mxu1 %v1058_v5  ;;  %3181 = vmatprep.subr.bf16.mxu0 %v3674_v0  ;;  %v3421_v5 = vld [vmem:[%s4434_s2 + $0x68] sm:$0xff]  }
 0x3d7   : > { %3161 = vmatprep.subr.bf16.mxu1 %v3674_v0 }
 0x3dd   : > { %3158 = vmatmul.mubr.msk.bf16.vlgmr.msra.gmra.mrb[24].mxu1 %vm724_vm1, %v1052_v7 }
 0x3de   : > { %3163 = vmatprep.mubr.msk.bf16.mxu1 %vm3675_vm0, %v3674_v0  ;;  %3162 = vmatpush3.bf16.msra.mxu1 %v1117_v22 }
 0x3df   : > { %3187 = vmatprep.subr.bf16.mxu1 %v3674_v0 }
 0x4b0   : > { %v1094_v8 = vpop.f32.mrb[24].mxu1 }
 0x4b1   : > { %v1100_v9 = vmul.f32 0.17677669, %v1094_v8  ;;  %v3159_v10 = vpop.f32.mrb[25].mxu1 }
 0x4b2   : > { %v1097_v11 = vpop.f32.mrb[26].mxu1 }
 0x4b3   : > { %v3160_v12 = vpop.f32.mrb[27].mxu1  ;;  %v1101_v13 = vadd.f32 %v3991_v32, %v1100_v9 }
 0x4b4   : > { %v3422_v12 = vld [vmem:[%s4434_s2 + $0x20] sm:$0xff]  }
 0x4b5   : > { %v1102_v14 = vsel %vm779_vm3, %v1101_v13, -inf }
 0x4b6   : > { %1103 = vmax.xlane.f32.xlu0 %v1102_v14 }
 0x543   : > { %v1104_v23 = vpop.xlane.xlu0 %1103 }
 0x544   : > { %v1105_v24 = vsub.f32 %v1101_v13, %v1104_v23 }
 0x546   : > { %v1106_v25 = vmul.f32 1.442695, %v1105_v24 }
 0x548   : > { %3490 = vpow2.f32 %v1106_v25 }
 0x549   : > { %3492 = vrcp.f32 %v788_v52 }
 0x552   : > { %v3491_v27 = vpop.eup %3490 }
 0x553   : > { %v1108_v28 = vsel %vm779_vm3, %v3491_v27, 0.0  ;;  %v1111_v29 = vpack.c.bf16 %v3491_v27, %v3491_v27  ;;  %v3493_v60 = vpop.eup %3492 }
 0x554   : > { %1109 = vadd.xlane.f32.xlu1 %v1108_v28  ;;  %v839_v62 = vmul.f32 %v3493_v60, %v4032_v55  ;;  %v1244_v55 = vsel %vm724_vm1, %v3420_v4, 0  ;;  %v3424_v28 = vld [vmem:[%s4434_s2 + $0xa0] sm:$0xff]   ;;  %v3427_v4 = vld [vmem:[%s4434_s2 + $0x38] sm:$0xff]  }
 0x555   : > { %3164 = vmatmul.mubr.msk.bf16.vlgmr.msra.gmra.mrb[28].mxu1 %vm779_vm3, %v1111_v29  ;;  %3182 = vmatpush3.bf16.xpose.msra.mxu0 %v1244_v55  ;;  %v3425_v29 = vld [vmem:[%s4434_s2 + $0xa8] sm:$0xff]   ;;  %v3428_v55 = vld [vmem:[%s4434_s2 + $0x70] sm:$0xff]  }
 0x556   : > { %3188 = vmatpush3.bf16.xpose.msra.mxu1 %v1330_v30  ;;  %3203 = vmatprep.mubr.msk.bf16.mxu1 %vm3675_vm0, %v3674_v0  ;;  %v840_v2 = vpack.c.bf16 %v839_v62, %v839_v62 }
 0x557   : > { %3189 = vmatprep.subr.bf16.mxu1 %v3674_v0  ;;  %3207 = vmatprep.subr.bf16.mxu0 %v3674_v0 }
 0x55e   : > { %3190 = vmatpush3.bf16.xpose.msra.mxu1 %v1333_v33 }
 0x55f   : > { %3191 = vmatprep.subr.bf16.mxu1 %v3674_v0 }
 0x566   : > { %3192 = vmatpush3.bf16.xpose.msra.mxu1 %v1336_v36  ;;  %v2855_v36 = vld [vmem:[#allocation5 + $0x2] ss:$0 sm:$0xff] }
 0x567   : > { %3193 = vmatprep.subr.bf16.mxu1 %v3674_v0 }
 0x56e   : > { %3194 = vmatpush3.bf16.xpose.msra.mxu1 %v1339_v41 }
 0x56f   : > { %3195 = vmatprep.subr.bf16.mxu1 %v3674_v0 }
 0x576   : > { %3196 = vmatpush3.bf16.xpose.msra.mxu1 %v1342_v45 }
 0x577   : > { %3197 = vmatprep.subr.bf16.mxu1 %v3674_v0 }
 0x57e   : > { %3198 = vmatpush3.bf16.xpose.msra.mxu1 %v1345_v49 }
 0x57f   : > { %3199 = vmatprep.subr.bf16.mxu1 %v3674_v0 }
 0x586   : > { %3200 = vmatpush3.bf16.xpose.msra.mxu1 %v1348_v54 }
 0x587   : > { %3201 = vmatprep.subr.bf16.mxu1 %v3674_v0 }
 0x58e   : > { %3202 = vmatpush3.bf16.xpose.msra.mxu1 %v1351_v59 }
 0x58f   : > { %3215 = vmatprep.subr.bf16.mxu1 %v3674_v0 }
 0x595   : > { %3204 = vmatmul.mubr.msk.bf16.vlgmr.msra.gmra.mrb[32].mxu1 %vm724_vm1, %v840_v2 }
 0x596   : > { %3216 = vmatpush3.bf16.xpose.msra.mxu1 %v3419_v1  ;;  %3219 = vmatprep.mubr.msk.bf16.mxu1 %vm3675_vm0, %v3674_v0 }
 0x597   : > { %3217 = vmatprep.subr.bf16.mxu1 %v3674_v0 }
 0x59e   : > { %3218 = vmatpush3.bf16.xpose.msra.mxu1 %v3421_v5  ;;  %v3430_v5 = vld [vmem:[%s4436_s4 + $0x80] sm:$0xff]  }
 0x59f   : > { %3231 = vmatprep.subr.bf16.mxu1 %v3674_v0 }
 0x5a5   : > { %3220 = vmatmul.mubr.bf16.vlgmr.msra.gmra.mrb[36].mxu1 %v3952_v3 }
 0x5a6   : > { %3233 = vmatprep.mubr.msk.bf16.mxu1 %vm3675_vm0, %v3674_v0 }
 0x5e1   : > { %v1110_v6 = vpop.xlane.xlu1 %1109 }
 0x5e2   : > { %3494 = vrcp.f32 %v1110_v6  ;;  %v1759_v6 = vsel %vm724_vm1, %v3430_v5, 0 }
 0x5ec   : > { %v3495_v7 = vpop.eup %3494 }
 0x628   : > { %v1153_v8 = vpop.f32.mrb[28].mxu1 }
 0x629   : > { %v1160_v9 = vmul.f32 %v3495_v7, %v1153_v8  ;;  %v3165_v10 = vpop.f32.mrb[29].mxu1  ;;  %v3431_v7 = vld [vmem:[%s4436_s4 + $0x88] sm:$0xff]   ;;  %v3429_v8 = vld [vmem:[%s4434_s2 + $0x78] sm:$0xff]  }
 0x62a   : > { %v1156_v11 = vpop.f32.mrb[30].mxu1  ;;  %v3432_v10 = vld [vmem:[%s4436_s4 + $0x90] sm:$0xff]  }
 0x62b   : > { %v1161_v13 = vpack.c.bf16 %v1160_v9, %v1160_v9  ;;  %v3166_v14 = vpop.f32.mrb[31].mxu1  ;;  %v1762_v9 = vsel %vm724_vm1, %v3431_v7, 0  ;;  %v1765_v11 = vsel %vm724_vm1, %v3432_v10, 0 }
 0x62c   : > { %v3434_v14 = vld [vmem:[%s4436_s4 + $0xa0] sm:$0xff]  }
 0x62d   : > { %3184 = vmatmul.mubr.msk.bf16.vlgmr.msra.gmra.mrb[8].mxu0 %vm724_vm1, %v1161_v13 }
 0x62e   : > { %3208 = vmatpush3.bf16.xpose.msra.mxu0 %v3422_v12  ;;  %3211 = vmatprep.mubr.msk.bf16.mxu0 %vm3675_vm0, %v3674_v0  ;;  %v3433_v12 = vld [vmem:[%s4436_s4 + $0x98] sm:$0xff]  }
 0x62f   : > { %3209 = vmatprep.subr.bf16.mxu0 %v3674_v0  ;;  %v1768_v13 = vsel %vm724_vm1, %v3433_v12, 0  ;;  %v3441_v12 = vld [vmem:[%s4436_s4 + $0xc8] sm:$0xff]  }
 0x636   : > { %3210 = vmatpush3.bf16.xpose.msra.mxu0 %v3423_v15  ;;  %v1771_v15 = vsel %vm724_vm1, %v3434_v14, 0  ;;  %v3442_v14 = vld [vmem:[%s4436_s4 + $0xd0] sm:$0xff]  }
 0x637   : > { %3223 = vmatprep.subr.bf16.mxu0 %v3674_v0 }
 0x63d   : > { %3212 = vmatmul.mubr.bf16.vlgmr.msra.gmra.mrb[12].mxu0 %v3952_v3 }
 0x63e   : > { %3227 = vmatprep.mubr.msk.bf16.mxu0 %vm3675_vm0, %v3674_v0  ;;  %3224 = vmatpush3.bf16.xpose.msra.mxu0 %v3424_v28 }
 0x63f   : > { %3225 = vmatprep.subr.bf16.mxu0 %v3674_v0 }
 0x646   : > { %3226 = vmatpush3.bf16.xpose.msra.mxu0 %v3425_v29 }
 0x647   : > { %3243 = vmatprep.subr.bf16.mxu0 %v3674_v0 }
 0x64d   : > { %3228 = vmatmul.mubr.bf16.vlgmr.msra.gmra.mrb[16].mxu0 %v3952_v3 }
 0x64e   : > { %3259 = vmatprep.mubr.msk.bf16.mxu0 %vm3675_vm0, %v3674_v0  ;;  %3244 = vmatpush3.bf16.xpose.msra.mxu0 %v1759_v6 }
 0x64f   : > { %3245 = vmatprep.subr.bf16.mxu0 %v3674_v0 }
 0x656   : > { %3246 = vmatpush3.bf16.xpose.msra.mxu0 %v1762_v9 }
 0x657   : > { %3247 = vmatprep.subr.bf16.mxu0 %v3674_v0 }
 0x65e   : > { %3248 = vmatpush3.bf16.xpose.msra.mxu0 %v1765_v11  ;;  %v3440_v11 = vld [vmem:[%s4436_s4 + $0xc0] sm:$0xff]  }
 0x65f   : > { %3249 = vmatprep.subr.bf16.mxu0 %v3674_v0 }
 0x666   : > { %3250 = vmatpush3.bf16.xpose.msra.mxu0 %v1768_v13  ;;  %v2192_v13 = vsel %vm724_vm1, %v3441_v12, 0  ;;  %v3484_v12 = vld [vmem:[#allocation7 + $0x64] ss:$8 sps:$4 sm:$0xff]  }
 0x667   : > { %3251 = vmatprep.subr.bf16.mxu0 %v3674_v0 }
 0x668   : > { %v1387_v16 = vpop.f32.mrb[32].mxu1 }
 0x669   : > { %v3205_v17 = vpop.f32.mrb[33].mxu1 }
 0x66a   : > { %v1390_v18 = vpop.f32.mrb[34].mxu1 }
 0x66b   : > { %v3206_v19 = vpop.f32.mrb[35].mxu1  ;;  %v3436_v18 = vld [vmem:[%s4436_s4 + $0xb0] sm:$0xff]  }
 0x66c   : > { %v1777_v19 = vsel %vm724_vm1, %v3436_v18, 0  ;;  %v3444_v18 = vld [vmem:[%s4436_s4 + $0xe0] sm:$0xff]  }
 0x66e   : > { %3252 = vmatpush3.bf16.xpose.msra.mxu0 %v1771_v15  ;;  %v2195_v15 = vsel %vm724_vm1, %v3442_v14, 0 }
 0x66f   : > { %3253 = vmatprep.subr.bf16.mxu0 %v3674_v0 }
 0x678   : > { %v1517_v21 = vpop.f32.mrb[36].mxu1 }
 0x679   : > { %v1518_v22 = vadd.f32 %v2862_v20, %v1517_v21  ;;  %v3221_v23 = vpop.f32.mrb[37].mxu1  ;;  %v3437_v20 = vld [vmem:[%s4436_s4 + $0xb8] sm:$0xff]  }
 0x67a   : > { %v1520_v24 = vpop.f32.mrb[38].mxu1  ;;  %v1780_v21 = vsel %vm724_vm1, %v3437_v20, 0  ;;  %v3439_v23 = vld [vmem:[%s4434_s2 + $0xb8] sm:$0xff]   ;;  %v3445_v20 = vld [vmem:[%s4436_s4 + $0xe8] sm:$0xff]  }
 0x67b   : > { %v1589_v25 = vpack.c.bf16 %v1518_v22, %v1518_v22  ;;  %v3222_v26 = vpop.f32.mrb[39].mxu1  ;;  %v3438_v22 = vld [vmem:[%s4434_s2 + $0xb0] sm:$0xff]  }
 0x67d   : > { %v1594_v27 = vsel %vm724_vm1, %v1589_v25, 0 }
 0x67e   : > { %3232 = vmatpush3.bf16.xpose.msra.mxu1 %v1594_v27 }
 0x67f   : > { %3237 = vmatprep.subr.bf16.mxu1 %v3674_v0 }
 0x700   : > { %v1280_v30 = vpop.f32.mrb[8].mxu0 }
 0x701   : > { %v4169_v31 = vadd.f32 %v1387_v16, %v1280_v30  ;;  %v3185_v33 = vpop.f32.mrb[9].mxu0  ;;  %v3435_v16 = vld [vmem:[%s4436_s4 + $0xa8] sm:$0xff]  }
 0x702   : > { %v1283_v34 = vpop.f32.mrb[10].mxu0  ;;  %v1774_v17 = vsel %vm724_vm1, %v3435_v16, 0  ;;  %v3443_v16 = vld [vmem:[%s4436_s4 + $0xd8] sm:$0xff]  }
 0x703   : > { %v3186_v35 = vpop.f32.mrb[11].mxu0  ;;  %3254 = vmatpush3.bf16.xpose.msra.mxu0 %v1774_v17  ;;  %v2198_v17 = vsel %vm724_vm1, %v3443_v16, 0 }
 0x704   : > { %3255 = vmatprep.subr.bf16.mxu0 %v3674_v0 }
 0x70b   : > { %3256 = vmatpush3.bf16.xpose.msra.mxu0 %v1777_v19  ;;  %v2201_v19 = vsel %vm724_vm1, %v3444_v18, 0  ;;  %v2948_v18 = vld [vmem:[%s4438_s6] ss:$0 sm:$0xff] }
 0x70c   : > { %3257 = vmatprep.subr.bf16.mxu0 %v3674_v0 }
 0x710   : > { %v1452_v37 = vpop.f32.mrb[12].mxu0 }
 0x711   : > { %v1453_v38 = vadd.f32 %v2855_v36, %v1452_v37  ;;  %v3213_v39 = vpop.f32.mrb[13].mxu0  ;;  %v2910_v37 = vld [vmem:[#allocation5 + $0x7] ss:$0 sm:$0xff] }
 0x712   : > { %v1455_v40 = vpop.f32.mrb[14].mxu0 }
 0x713   : > { %v1588_v41 = vpack.c.bf16 %v1453_v38, %v1453_v38  ;;  %v3214_v42 = vpop.f32.mrb[15].mxu0  ;;  %3258 = vmatpush3.bf16.xpose.msra.mxu0 %v1780_v21  ;;  %v2204_v21 = vsel %vm724_vm1, %v3445_v20, 0  ;;  %v2949_v20 = vld [vmem:[%s4439_s7] ss:$0 sm:$0xff] }
 0x714   : > { %3299 = vmatprep.subr.bf16.mxu0 %v3674_v0 }
 0x715   : > { %3234 = vmatmul.mubr.msk.bf16.vlgmr.msra.gmra.mrb[40].mxu1 %vm724_vm1, %v1588_v41 }
 0x716   : > { %3239 = vmatprep.mubr.msk.bf16.mxu1 %vm3675_vm0, %v3674_v0 }
 0x720   : > { %v1582_v44 = vpop.f32.mrb[16].mxu0 }
 0x721   : > { %v1583_v45 = vadd.f32 %v2869_v43, %v1582_v44  ;;  %v3229_v46 = vpop.f32.mrb[17].mxu0  ;;  %v2903_v44 = vld [vmem:[#allocation5 + $0x3] ss:$0 sm:$0xff] }
 0x722   : > { %v1585_v47 = vpop.f32.mrb[18].mxu0 }
 0x723   : > { %v1648_v48 = vpack.c.bf16 %v1583_v45, %v1583_v45  ;;  %v3230_v49 = vpop.f32.mrb[19].mxu0 }
 0x725   : > { %v1653_v50 = vsel %vm794_vm2, %v1648_v48, 0  ;;  %v2917_v48 = vld [vmem:[#allocation5 + $0xb] ss:$0 sm:$0xff] }
 0x726   : > { %3238 = vmatpush3.bf16.msra.mxu1 %v1653_v50 }
 0x727   : > { %3263 = vmatprep.subr.bf16.mxu1 %v3674_v0 }
 0x7e8   : > { %v1630_v51 = vpop.f32.mrb[40].mxu1 }
 0x7e9   : > { %v1636_v52 = vmul.f32 0.17677669, %v1630_v51  ;;  %v3235_v53 = vpop.f32.mrb[41].mxu1 }
 0x7ea   : > { %v1633_v54 = vpop.f32.mrb[42].mxu1 }
 0x7eb   : > { %v3236_v56 = vpop.f32.mrb[43].mxu1  ;;  %v1637_v57 = vadd.f32 %v3991_v32, %v1636_v52 }
 0x7ed   : > { %v1638_v58 = vsel %vm779_vm3, %v1637_v57, -inf }
 0x7ee   : > { %1639 = vmax.xlane.f32.xlu0 %v1638_v58 }
 0x87b   : > { %v1640_v59 = vpop.xlane.xlu0 %1639 }
 0x87c   : > { %v1641_v60 = vsub.f32 %v1637_v57, %v1640_v59 }
 0x87e   : > { %v1642_v61 = vmul.f32 1.442695, %v1641_v60 }
 0x880   : > { %3496 = vpow2.f32 %v1642_v61 }
 0x88a   : > { %v3497_v62 = vpop.eup %3496 }
 0x88b   : > { %v1644_v1 = vsel %vm779_vm3, %v3497_v62, 0.0  ;;  %v1647_v2 = vpack.c.bf16 %v3497_v62, %v3497_v62 }
 0x88c   : > { %1645 = vadd.xlane.f32.xlu0 %v1644_v1 }
 0x88d   : > { %3240 = vmatmul.mubr.msk.bf16.vlgmr.msra.gmra.mrb[44].mxu1 %vm779_vm3, %v1647_v2 }
 0x88e   : > { %3264 = vmatpush3.bf16.xpose.msra.mxu1 %v3426_v63  ;;  %3267 = vmatprep.mubr.msk.bf16.mxu1 %vm3675_vm0, %v3674_v0 }
 0x88f   : > { %3265 = vmatprep.subr.bf16.mxu1 %v3674_v0 }
 0x896   : > { %3266 = vmatpush3.bf16.xpose.msra.mxu1 %v3427_v4 }
 0x897   : > { %3271 = vmatprep.subr.bf16.mxu1 %v3674_v0 }
 0x89d   : > { %3268 = vmatmul.mubr.bf16.vlgmr.msra.gmra.mrb[48].mxu1 %v3952_v3 }
 0x89e   : > { %3272 = vmatpush3.bf16.xpose.msra.mxu1 %v3428_v55  ;;  %3275 = vmatprep.mubr.msk.bf16.mxu1 %vm3675_vm0, %v3674_v0 }
 0x89f   : > { %3273 = vmatprep.subr.bf16.mxu1 %v3674_v0 }
 0x8a6   : > { %3274 = vmatpush3.bf16.xpose.msra.mxu1 %v3429_v8 }
 0x8a7   : > { %3279 = vmatprep.subr.bf16.mxu1 %v3674_v0 }
 0x8ad   : > { %3276 = vmatmul.mubr.bf16.vlgmr.msra.gmra.mrb[52].mxu1 %v3952_v3 }
 0x8ae   : > { %3283 = vmatprep.mubr.msk.bf16.mxu1 %vm3675_vm0, %v3674_v0  ;;  %3280 = vmatpush3.bf16.xpose.msra.mxu1 %v3438_v22  ;;  %v3446_v22 = vld [vmem:[%s4436_s4 + $0xf0] sm:$0xff]  }
 0x8af   : > { %3281 = vmatprep.subr.bf16.mxu1 %v3674_v0 }
 0x8b6   : > { %3282 = vmatpush3.bf16.xpose.msra.mxu1 %v3439_v23  ;;  %v2207_v23 = vsel %vm724_vm1, %v3446_v22, 0 }
 0x8b7   : > { %3287 = vmatprep.subr.bf16.mxu1 %v3674_v0 }
 0x8bd   : > { %3284 = vmatmul.mubr.bf16.vlgmr.msra.gmra.mrb[56].mxu1 %v3952_v3 }
 0x8be   : > { %3289 = vmatprep.mubr.msk.bf16.mxu1 %vm3675_vm0, %v3674_v0 }
 0x919   : > { %v1646_v24 = vpop.xlane.xlu0 %1645 }
 0x91a   : > { %3498 = vrcp.f32 %v1646_v24  ;;  %v3447_v24 = vld [vmem:[%s4436_s4 + $0xf8] sm:$0xff]  }
 0x924   : > { %v3499_v25 = vpop.eup %3498 }
 0x960   : > { %v1689_v26 = vpop.f32.mrb[44].mxu1 }
 0x961   : > { %v1696_v27 = vmul.f32 %v3499_v25, %v1689_v26  ;;  %v3241_v28 = vpop.f32.mrb[45].mxu1  ;;  %v2210_v25 = vsel %vm724_vm1, %v3447_v24, 0  ;;  %v3487_v24 = vld [vmem:[#allocation7 + $0x74] ss:$8 sps:$4 sm:$0xff]  }
 0x962   : > { %v1692_v29 = vpop.f32.mrb[46].mxu1 }
 0x963   : > { %v1697_v30 = vpack.c.bf16 %v1696_v27, %v1696_v27  ;;  %v3242_v33 = vpop.f32.mrb[47].mxu1 }
 0x965   : > { %3260 = vmatmul.mubr.msk.bf16.vlgmr.msra.gmra.mrb[20].mxu0 %vm724_vm1, %v1697_v30 }
 0x966   : > { %3315 = vmatprep.mubr.msk.bf16.mxu0 %vm3675_vm0, %v3674_v0 }
 0x970   : > { %v1882_v34 = vpop.f32.mrb[48].mxu1 }
 0x971   : > { %v3269_v35 = vpop.f32.mrb[49].mxu1  ;;  %v1883_v46 = vadd.f32 %v2903_v44, %v1882_v34  ;;  %v3448_v44 = vld [vmem:[%s4440_s8 + $0x40] sm:$0xff]  }
 0x972   : > { %v1885_v3 = vpop.f32.mrb[50].mxu1 }
 0x973   : > { %v3270_v36 = vpop.f32.mrb[51].mxu1  ;;  %v2018_v47 = vpack.c.bf16 %v1883_v46, %v1883_v46  ;;  %v3508_v3 = vld [vmem:[%s3927_s24] sm:$0xf]  ;;  %v3450_v46 = vld [vmem:[%s4440_s8 + $0x48] sm:$0xff]   ;;  %s2986_s24 = sshll.u32 %s3773_s17, 6  ;;  %s3676_s17 = smov [#allocation8]  }
 0x974   : > { %s4388_s1 = scalar_lea.hbm %s4476_s0, %s2986_s24  ;;  %s3599_s25 = sshll.u32 %s3676_s17, 4  ;;  %s3600_s25 = int_to_ptr.vmem [resolvable:$false] %s3599_s25 }
 0x975   : > { %p3602_p9 = scmp.lt.s32.totalorder %s4390_s11, %s3600_s25 }
 0x980   : > { %v1947_v38 = vpop.f32.mrb[52].mxu1 }
 0x981   : > { %v1948_v39 = vadd.f32 %v2910_v37, %v1947_v38  ;;  %v3277_v40 = vpop.f32.mrb[53].mxu1 }
 0x982   : > { %v1950_v41 = vpop.f32.mrb[54].mxu1  ;;  %v2947_v40 = vld [vmem:[%s4437_s5] ss:$0 sm:$0xff] }
 0x983   : > { %v2019_v42 = vpack.c.bf16 %v1948_v39, %v1948_v39  ;;  %v3278_v43 = vpop.f32.mrb[55].mxu1 }
 0x985   : > { %v2024_v45 = vsel %vm724_vm1, %v2019_v42, 0 }
 0x986   : > { %3288 = vmatpush3.bf16.xpose.msra.mxu1 %v2024_v45  ;;  %v3449_v45 = vld [vmem:[%s4440_s8] sm:$0xff]  }
 0x987   : > { %3293 = vmatprep.subr.bf16.mxu1 %v3674_v0 }
 0x98d   : > { %3290 = vmatmul.mubr.msk.bf16.vlgmr.msra.gmra.mrb[60].mxu1 %vm724_vm1, %v2018_v47  ;;  %v3451_v47 = vld [vmem:[%s4440_s8 + $0x8] sm:$0xff]  }
 0x98e   : > { %3295 = vmatprep.mubr.msk.bf16.mxu1 %vm3675_vm0, %v3674_v0 }
 0x990   : > { %v2012_v49 = vpop.f32.mrb[56].mxu1 }
 0x991   : > { %v2013_v50 = vadd.f32 %v2917_v48, %v2012_v49  ;;  %v3285_v51 = vpop.f32.mrb[57].mxu1  ;;  %v3452_v48 = vld [vmem:[%s4440_s8 + $0x50] sm:$0xff]  }
 0x992   : > { %v2015_v52 = vpop.f32.mrb[58].mxu1  ;;  %v3453_v49 = vld [vmem:[%s4440_s8 + $0x10] sm:$0xff]   ;;  %v3455_v51 = vld [vmem:[%s4440_s8 + $0x18] sm:$0xff]  }
 0x993   : > { %v2078_v53 = vpack.c.bf16 %v2013_v50, %v2013_v50  ;;  %v3286_v54 = vpop.f32.mrb[59].mxu1  ;;  %v3454_v50 = vld [vmem:[%s4440_s8 + $0x58] sm:$0xff]   ;;  %v3456_v52 = vld [vmem:[%s4440_s8 + $0x60] sm:$0xff]  }
 0x995   : > { %v2083_v56 = vsel %vm794_vm2, %v2078_v53, 0  ;;  %v3457_v53 = vld [vmem:[%s4440_s8 + $0x20] sm:$0xff]  }
 0x996   : > { %3294 = vmatpush3.bf16.msra.mxu1 %v2083_v56 }
 0x997   : > { %3077 = vmatprep.subr.bf16.mxu1 %v3448_v44 }
 0xa38   : > { %v1816_v57 = vpop.f32.mrb[20].mxu0 }
 0xa39   : > { %v4265_v58 = vadd.f32 %v1816_v57, %v4169_v31  ;;  %v3261_v59 = vpop.f32.mrb[21].mxu0 }
 0xa3a   : > { %v1819_v60 = vpop.f32.mrb[22].mxu0  ;;  %v3458_v59 = vld [vmem:[%s4440_s8 + $0x68] sm:$0xff]  }
 0xa3b   : > { %v3262_v61 = vpop.f32.mrb[23].mxu0  ;;  %v3459_v60 = vld [vmem:[%s4440_s8 + $0x28] sm:$0xff]  }
 0xa3c   : > { %v3460_v61 = vld [vmem:[%s4440_s8 + $0x70] sm:$0xff]  }
 0xa60   : > { %v2060_v62 = vpop.f32.mrb[60].mxu1 }
 0xa61   : > { %v2066_v63 = vmul.f32 0.17677669, %v2060_v62  ;;  %v3291_v1 = vpop.f32.mrb[61].mxu1  ;;  %v3461_v62 = vld [vmem:[%s4440_s8 + $0x30] sm:$0xff]  }
 0xa62   : > { %v2063_v2 = vpop.f32.mrb[62].mxu1  ;;  %v3463_v1 = vld [vmem:[%s4440_s8 + $0x38] sm:$0xff]  }
 0xa63   : > { %v3292_v4 = vpop.f32.mrb[63].mxu1  ;;  %v2067_v55 = vadd.f32 %v3991_v32, %v2066_v63  ;;  %v2189_v32 = vsel %vm724_vm1, %v3440_v11, 0  ;;  %v3462_v63 = vld [vmem:[%s4440_s8 + $0x78] sm:$0xff]   ;;  %v3481_v11 = vld [vmem:[#allocation7 + $0x54] ss:$8 sps:$4 sm:$0xff]  }
 0xa64   : > { %3300 = vmatpush3.bf16.xpose.msra.mxu0 %v2189_v32  ;;  %v3464_v2 = vld [vmem:[#allocation7] ss:$8 sps:$4 sm:$0xff]   ;;  %v3466_v4 = vld [vmem:[#allocation7 + $0x4] ss:$8 sps:$4 sm:$0xff]   ;;  %v3479_v32 = vld [vmem:[#allocation7 + $0x50] ss:$8 sps:$4 sm:$0xff]  }
 0xa65   : > { %v2068_v5 = vsel %vm779_vm3, %v2067_v55, -inf  ;;  %3301 = vmatprep.subr.bf16.mxu0 %v3674_v0 }
 0xa66   : > { %2069 = vmax.xlane.f32.xlu1 %v2068_v5  ;;  %v3467_v5 = vld [vmem:[#allocation7 + $0x10] ss:$8 sps:$4 sm:$0xff]  }
 0xa6c   : > { %3302 = vmatpush3.bf16.xpose.msra.mxu0 %v2192_v13  ;;  %v3482_v13 = vld [vmem:[#allocation7 + $0x60] ss:$8 sps:$4 sm:$0xff]  }
 0xa6d   : > { %3303 = vmatprep.subr.bf16.mxu0 %v3674_v0 }
 0xa74   : > { %3304 = vmatpush3.bf16.xpose.msra.mxu0 %v2195_v15 }
 0xa75   : > { %3305 = vmatprep.subr.bf16.mxu0 %v3674_v0 }
 0xa7c   : > { %3306 = vmatpush3.bf16.xpose.msra.mxu0 %v2198_v17 }
 0xa7d   : > { %3307 = vmatprep.subr.bf16.mxu0 %v3674_v0 }
 0xa84   : > { %3308 = vmatpush3.bf16.xpose.msra.mxu0 %v2201_v19 }
 0xa85   : > { %3309 = vmatprep.subr.bf16.mxu0 %v3674_v0 }
 0xa8c   : > { %3310 = vmatpush3.bf16.xpose.msra.mxu0 %v2204_v21 }
 0xa8d   : > { %3311 = vmatprep.subr.bf16.mxu0 %v3674_v0 }
 0xa94   : > { %3312 = vmatpush3.bf16.xpose.msra.mxu0 %v2207_v23 }
 0xa95   : > { %3313 = vmatprep.subr.bf16.mxu0 %v3674_v0  ;;  %v2253_v0 = vunpack.c.l.bf16 %v3508_v3 }
 0xa9c   : > { %3314 = vmatpush3.bf16.xpose.msra.mxu0 %v2210_v25  ;;  %v3485_v25 = vld [vmem:[#allocation7 + $0x70] ss:$8 sps:$4 sm:$0xff]  }
 0xa9d   : > { %2580 = vmatprep.subr.bf16.mxu0 %v3466_v4 }
 0xaf3   : > { %v2070_v6 = vpop.xlane.xlu1 %2069 }
 0xaf4   : > { %v2071_v7 = vsub.f32 %v2067_v55, %v2070_v6  ;;  %v3469_v55 = vld [vmem:[#allocation7 + $0x14] ss:$8 sps:$4 sm:$0xff]   ;;  %v3472_v6 = vld [vmem:[#allocation7 + $0x24] ss:$8 sps:$4 sm:$0xff]  }
 0xaf6   : > { %v2072_v8 = vmul.f32 1.442695, %v2071_v7  ;;  %v3470_v7 = vld [vmem:[#allocation7 + $0x20] ss:$8 sps:$4 sm:$0xff]  }
 0xaf8   : > { %3500 = vpow2.f32 %v2072_v8  ;;  %v3475_v8 = vld [vmem:[#allocation7 + $0x34] ss:$8 sps:$4 sm:$0xff]  }
 0xb02   : > { %v3501_v9 = vpop.eup %3500 }
 0xb03   : > { %v2074_v31 = vsel %vm779_vm3, %v3501_v9, 0.0  ;;  %v2077_v10 = vpack.c.bf16 %v3501_v9, %v3501_v9  ;;  %v3473_v9 = vld [vmem:[#allocation7 + $0x30] ss:$8 sps:$4 sm:$0xff]  }
 0xb04   : > { %2075 = vadd.xlane.f32.xlu1 %v2074_v31  ;;  %v3478_v31 = vld [vmem:[#allocation7 + $0x44] ss:$8 sps:$4 sm:$0xff]  }
 0xb05   : > { %3296 = vmatmul.mubr.msk.bf16.vlgmr.msra.gmra.mrb[64].mxu1 %vm779_vm3, %v2077_v10  ;;  %v3476_v10 = vld [vmem:[#allocation7 + $0x40] ss:$8 sps:$4 sm:$0xff]  }
 0xb06   : > { %3078 = vmatpush3.bf16.xpose.msra.mxu1 %v3449_v45 }
 0xb07   : > { %3079 = vmatprep.subr.bf16.mxu1 %v3450_v46 }
 0xb0e   : > { %3080 = vmatpush3.bf16.xpose.msra.mxu1 %v3451_v47 }
 0xb0f   : > { %3081 = vmatprep.subr.bf16.mxu1 %v3452_v48 }
 0xb16   : > { %3082 = vmatpush3.bf16.xpose.msra.mxu1 %v3453_v49 }
 0xb17   : > { %3083 = vmatprep.subr.bf16.mxu1 %v3454_v50 }
 0xb1e   : > { %3084 = vmatpush3.bf16.xpose.msra.mxu1 %v3455_v51 }
 0xb1f   : > { %3085 = vmatprep.subr.bf16.mxu1 %v3456_v52 }
 0xb26   : > { %3086 = vmatpush3.bf16.xpose.msra.mxu1 %v3457_v53 }
 0xb27   : > { %3087 = vmatprep.subr.bf16.mxu1 %v3458_v59  ;;  %v2983_v59 = vld [vmem:[%s4474_s22] ss:$0 sm:$0xff]  ;;  %s3601_s22 = scalar_lea.vmem %s3600_s25, 128 }
 0xb28   : > { %p3603_p12 = scmp.lt.s32.totalorder %s3601_s22, %s3595_s26 }
 0xb2a   : > { %p3604_p2 = por %p3603_p12, %p3602_p9 }
 0xb2c   : > { %p3605_p13 = pnand %p3604_p2, %p3598_p5 }
 0xb2e   : > { %3088 = vmatpush3.bf16.xpose.msra.mxu1 %v3459_v60 }
 0xb2f   : > { %3089 = vmatprep.subr.bf16.mxu1 %v3460_v61  ;;  %v2984_v61 = vld [vmem:[%s4475_s19] ss:$0 sm:$0xff] }
 0xb36   : > { %3090 = vmatpush3.bf16.xpose.msra.mxu1 %v3461_v62 }
 0xb37   : > { %3091 = vmatprep.subr.bf16.mxu1 %v3462_v63 }
 0xb3e   : > { %3092 = vmatpush3.bf16.xpose.msra.mxu1 %v3463_v1 }
 0xb91   : > { %v2076_v26 = vpop.xlane.xlu1 %2075 }
 0xb92   : > { %3502 = vrcp.f32 %v2076_v26  ;;  %v2326_v26 = vlaneseq }
 0xb9c   : > { %v3503_v27 = vpop.eup %3502 }
 0xbd8   : > { %v2119_v28 = vpop.f32.mrb[64].mxu1 }
 0xbd9   : > { %v2126_v29 = vmul.f32 %v3503_v27, %v2119_v28  ;;  %v3297_v30 = vpop.f32.mrb[65].mxu1  ;;  %v2327_v27 = vshrl.u32 %v2326_v26, 7 }
 0xbda   : > { %v2122_v33 = vpop.f32.mrb[66].mxu1 }
 0xbdb   : > { %v2127_v34 = vpack.c.bf16 %v2126_v29, %v2126_v29  ;;  %v3298_v35 = vpop.f32.mrb[67].mxu1  ;;  %v2328_v28 = vsub.s32 0, %v2327_v27  ;;  %v2324_v29 = vld [vmem:[%s4441_s9] sm:$0x3]  ;;  %v2332_v30 = vsub.s32 1, %v2327_v27 }
 0xbdd   : > { %3316 = vmatmul.mubr.msk.bf16.vlgmr.msra.gmra.mrb[24].mxu0 %vm724_vm1, %v2127_v34  ;;  %v2329_v33 = vrot.slane %v2324_v29, %v2328_v28  ;;  %v2333_v34 = vrot.slane %v2324_v29, %v2332_v30 }
 0xbde   : > { %2581 = vmatpush1.bf16.xpose.msra.mxu0 %v3464_v2 }
 0xbdf   : > { %2582 = vmatprep.subr.bf16.mxu0 %v3469_v55 }
 0xbe6   : > { %2583 = vmatpush1.bf16.xpose.msra.mxu0 %v3467_v5 }
 0xbe7   : > { %2584 = vmatprep.subr.bf16.mxu0 %v3472_v6 }
 0xbee   : > { %2585 = vmatpush1.bf16.xpose.msra.mxu0 %v3470_v7 }
 0xbef   : > { %2586 = vmatprep.subr.bf16.mxu0 %v3475_v8 }
 0xbf6   : > { %2587 = vmatpush1.bf16.xpose.msra.mxu0 %v3473_v9 }
 0xbf7   : > { %2588 = vmatprep.subr.bf16.mxu0 %v3478_v31 }
 0xbfe   : > { %2589 = vmatpush1.bf16.xpose.msra.mxu0 %v3476_v10 }
 0xbff   : > { %2590 = vmatprep.subr.bf16.mxu0 %v3481_v11 }
 0xc06   : > { %2591 = vmatpush1.bf16.xpose.msra.mxu0 %v3479_v32 }
 0xc07   : > { %2592 = vmatprep.subr.bf16.mxu0 %v3484_v12 }
 0xc0e   : > { %2593 = vmatpush1.bf16.xpose.msra.mxu0 %v3482_v13 }
 0xc0f   : > { %2594 = vmatprep.subr.bf16.mxu0 %v3487_v24 }
 0xc16   : > { %2595 = vmatpush1.bf16.xpose.msra.mxu0 %v3485_v25 }
 0xcb0   : > { %v2246_v36 = vpop.f32.mrb[24].mxu0 }
 0xcb1   : > { %v2252_v37 = vadd.f32 %v2246_v36, %v4265_v58  ;;  %v3317_v38 = vpop.f32.mrb[25].mxu0 }
 0xcb2   : > { %v2249_v39 = vpop.f32.mrb[26].mxu0 }
 0xcb3   : > { %v2254_v41 = vadd.f32 %v2253_v0, %v2252_v37  ;;  %v3318_v42 = vpop.f32.mrb[27].mxu0 }
 0xcb5   : > { %v2262_v43 = vadd.f32 %v2947_v40, %v2254_v41 }
 0xcb7   : > { %2265 = vadd.xlane.f32.xlu0 %v2262_v43 }
 0xd44   : > { %v2266_v54 = vpop.xlane.xlu0 %2265 }
 0xd45   : > { %v2268_v56 = vmul.f32 0.0078125, %v2266_v54 }
 0xd47   : > { %v2269_v57 = vsub.f32 %v2262_v43, %v2268_v56  ;;  %v2966_v43 = vld [vmem:[%s4473_s14] ss:$0 sm:$0xff] }
 0xd49   : > { %v2270_v58 = vmul.f32 %v2269_v57, %v2269_v57 }
 0xd4b   : > { %2271 = vadd.xlane.f32.xlu1 %v2270_v58 }
 0xdd8   : > { %v2272_v14 = vpop.xlane.xlu1 %2271 }
 0xdd9   : > { %v2273_v15 = vmul.f32 0.0078125, %v2272_v14 }
 0xddb   : > { %v2274_v16 = vadd.f32 1e-05, %v2273_v15 }
 0xddd   : > { %3504 = vrsqrt.f32 %v2274_v16 }
 0xde7   : > { %v3505_v17 = vpop.eup %3504 }
 0xde8   : > { %v2276_v19 = vmul.f32 %v3505_v17, %v2269_v57 }
 0xdea   : > { %v2283_v21 = vmul.f32 %v2948_v18, %v2276_v19 }
 0xdec   : > { %v2290_v22 = vadd.f32 %v2949_v20, %v2283_v21 }
 0xdee   : > { %v2291_v23 = vpack.c.bf16 %v2290_v22, %v2290_v22 }
 0xdf0   : > { %3093 = vmatprep.mubr.bf16.mxu1 %v2291_v23 }
 0xdf1   : > { %3094 = vmatmul.mubr.bf16.vlgmr.msra.gmra.mrb[68].mxu1 %v2291_v23 }
 0xec4   : > { %v2466_v35 = vpop.f32.mrb[68].mxu1 }
 0xec5   : > { %v2467_v3 = vadd.f32 %v2466_v35, %v2329_v33  ;;  %v2468_v0 = vpop.f32.mrb[69].mxu1 }
 0xec6   : > { %v2469_v36 = vadd.f32 %v2468_v0, %v2333_v34  ;;  %v2470_v37 = vpop.f32.mrb[70].mxu1 }
 0xec7   : > { %v2473_v38 = vmax.f32 %v2467_v3, 0.0  ;;  %v2471_v39 = vpop.f32.mrb[71].mxu1 }
 0xec8   : > { %v2474_v40 = vmax.f32 %v2469_v36, 0.0 }
 0xec9   : > { %v2475_v42 = vpack.c.bf16 %v2473_v38, %v2473_v38 }
 0xeca   : > { %v2476_v41 = vpack.c.bf16 %v2474_v40, %v2474_v40 }
 0xecc   : > { %2612 = vmatprep.mubr.bf16.mxu0 %v2476_v41 }
 0xecd   : > { %2613 = vmatmul.mubr.bf16.vlgmr.msra.gmra.mrb[28].mxu0 %v2475_v42 }
 0xfa0   : > { %v2614_v44 = vpop.f32.mrb[28].mxu0 }
 0xfa1   : > { %v2615_v45 = vadd.f32 %v2966_v43, %v2614_v44  ;;  %v2616_v46 = vpop.f32.mrb[29].mxu0 }
 0xfa2   : > { %v2617_v47 = vpop.f32.mrb[30].mxu0 }
 0xfa3   : > { %v2618_v48 = vpop.f32.mrb[31].mxu0  ;;  %v2620_v49 = vadd.f32 %v2615_v45, %v2290_v22 }
 0xfa5   : > { %2623 = vadd.xlane.f32.xlu0 %v2620_v49 }
0x1032   : > { %v2624_v50 = vpop.xlane.xlu0 %2623 }
0x1033   : > { %v2625_v51 = vmul.f32 0.0078125, %v2624_v50 }
0x1035   : > { %v2626_v52 = vsub.f32 %v2620_v49, %v2625_v51 }
0x1037   : > { %v2627_v53 = vmul.f32 %v2626_v52, %v2626_v52 }
0x1039   : > { %2628 = vadd.xlane.f32.xlu1 %v2627_v53 }
0x10c6   : > { %v2629_v54 = vpop.xlane.xlu1 %2628 }
0x10c7   : > { %v2630_v56 = vmul.f32 0.0078125, %v2629_v54 }
0x10c9   : > { %v2631_v57 = vadd.f32 1e-05, %v2630_v56 }
0x10cb   : > { %3506 = vrsqrt.f32 %v2631_v57 }
0x10d5   : > { %v3507_v58 = vpop.eup %3506 }
0x10d6   : > { %v2633_v60 = vmul.f32 %v3507_v58, %v2626_v52 }
0x10d8   : > { %v2640_v62 = vmul.f32 %v2983_v59, %v2633_v60 }
0x10da   : > { %v2647_v63 = vadd.f32 %v2984_v61, %v2640_v62 }
0x10dc   : > { %v2648_v1 = vpack.c.bf16 %v2647_v63, %v2647_v63 }
0x10de   : > { %2649 = vst [vmem:[%s522_s21] sm:$0xf] %v2648_v1 }
0x10df   : > { %3608 = shalt.err (!%p3605_p13)
}
0x10e0   : > { %s3609_s27 = scalar_lea.hbm %s4388_s1, 64  ;;  %s3613_s19 = scalar_lea.hbm %s4476_s0, 128 }
0x10e1   : > { %p3610_p6 = scmp.ne.s32.totalorder %s4388_s1, %s3609_s27  ;;  %p3614_p7 = scmp.lt.u32.totalorder %s4388_s1, %s4476_s0 }
0x10e2   : > { %p3615_p8 = scmp.lt.u32.totalorder %s3613_s19, %s3609_s27  ;;  %p3617_p0 = scmp.lt.u32.totalorder %s3609_s27, %s4388_s1 }
0x10e3   : > { %p3611_p10 = pnand %p3610_p6, %p4477_p1 }
0x10e4   : > { %p3616_p11 = por %p3615_p8, %p3614_p7 }
0x10e5   : > { %p3612_p4 = pneg %p3611_p10 }
0x10e6   : > { %p3618_p3 = por %p3617_p0, %p3616_p11 }
0x10e8   : > { %p3619_p5 = pnand %p3618_p3, %p3612_p4 }
0x10ea   : > { %3622 = shalt.err (!%p3619_p5)
}
0x10eb   : > { %3329 = dma.vmem_to_hbm [thread:$0]  (%p4477_p1), %s4390_s11, 64, %s4388_s1, %s2651_s20  }
0x10ec PF: > { %s4478_s13 = sld [smem:[#allocation12_spill]]  ;;  %s4479_s14 = sld [smem:[#allocation13_spill]] }
0x10ed   : > { %p4481_p12 = scmp.ge.s32.totalorder %s3665_s16, 2 }
0x10f2   : > { %s2676_s26 = sand.u32 1, %s4478_s13   ;;  %p4480_p9 = scmp.ne.s32.totalorder %s4479_s14, 0 }
0x10f3   : > { %s2677_s17 = scalar_lea.sflag [#allocation4], %s2676_s26 }
0x10f4   : > { %p3343_p2 = pnand %p4481_p12, %p4480_p9 }
0x10f6   : > { %3648 = dma.done.wait (!%p3343_p2), %s2677_s17, 64  }
0x10f7   : > { %3650 = vsyncadd (!%p3343_p2), %s2677_s17, 4294967232  ;;  %s4482_s25 = smov %s3862_s29  ;;  %p28_p13 = scmp.ge.s32.totalorder %s3862_s29, 4  }
0x10f8   : > { %s4483_s29 = smov %s3657_s30  ;;  %s4484_s30 = smov %s3661_s15 }
0x10f9   : > { %s4485_s15 = smov %s3871_s28  ;;  %s4486_s16 = smov %s4482_s25 }
0x10fa   :  { %30 = sbr.rel (!%p28_p13) target bundleno = 13 (0xd), region = 157 }
0x1101   :  { %2682 = vsyncpa [#allocation3], 1 }
0x1102   :  { %2684 = vsyncpa [#allocation3 + $0x1], 1 }
0x1103   :  { %2685 = vsyncpa [#allocation6], 1 }
0x1104   :  { %2686 = vsyncpa [#allocation4], 1 }
0x1105   :  { %2688 = vsyncpa [#allocation4 + $0x1], 1 }

</bundles_post_ra>
